<compile_context>
chip_gen: v5e
topology: v5e:2x2
jax: 0.10.0
libtpu: 0.0.40
codegen_flags: <defaults>
</compile_context>

<pallas_src>
import jax
import jax.numpy as jnp
from jax.experimental import pallas as pl
from jax.experimental.pallas import tpu as pltpu


# ----------------------------------------------------------------------------
# BN folding helpers
# ----------------------------------------------------------------------------
def _fold_bn(gamma, beta, mean, var, eps=1e-5):
    scale = gamma / jnp.sqrt(var + eps)
    bias = beta - mean * scale
    return scale, bias


# ----------------------------------------------------------------------------
# Fused block kernel (factory closes over static config)
# ----------------------------------------------------------------------------
def _make_block_kernel(H, W, Cin, planes, Cout, stride, th, shortcut_kind, mxu_dtype):
    Ho = (H - 1) // stride + 1   # 3x3 conv, pad=1
    Wo = (W - 1) // stride + 1

    def kernel(x_ref, w1_ref, b1_ref, w2_ref, b2_ref, w3_ref, b3_ref, *rest):
        if shortcut_kind == "conv":
            ws_ref, bs_ref, o_ref, exp_ref = rest
        else:
            o_ref, exp_ref = rest

        t = pl.program_id(1)

        # ---- Stage 1 (once per image): expand 1x1 conv + BN + ReLU, written
        # into a zero-padded VMEM scratch (halo == padding, no HBM pad copy).
        @pl.when(t == 0)
        def _():
            exp_ref[...] = jnp.zeros((H + 2, W + 2, planes), jnp.float32)
            x2d = x_ref[0].reshape(H * W, Cin).astype(mxu_dtype)
            e = jnp.dot(x2d, w1_ref[...], preferred_element_type=jnp.float32)
            e = jnp.maximum(e + b1_ref[...], 0.0)
            exp_ref[pl.ds(1, H), pl.ds(1, W), :] = e.reshape(H, W, planes)

        # ---- Stage 2: 3x3 depthwise conv (+ folded BN + ReLU) for this tile.
        if stride == 1:
            start = pl.multiple_of(t * th, th)
            rows = exp_ref[pl.ds(start, th + 2), :, :]          # (th+2, W+2, P)
            acc = jnp.zeros((th, Wo, planes), jnp.float32)
            for kh in range(3):
                for kw in range(3):
                    tap = rows[kh:kh + th, kw:kw + Wo, :]
                    acc = acc + tap * w2_ref[kh * 3 + kw][None, None, :]
        else:
            # 9-tap MAC at stride 1, then a single down-select (avoids 9
            # strided-slice relayouts per grid step).
            start = pl.multiple_of(2 * t * th, 2 * th)
            rows = exp_ref[pl.ds(start, 2 * th + 1), :, :]
            full = jnp.zeros((2 * th - 1, W, planes), jnp.float32)
            for kh in range(3):
                for kw in range(3):
                    tap = rows[kh:kh + 2 * th - 1, kw:kw + W, :]
                    full = full + tap * w2_ref[kh * 3 + kw][None, None, :]
            acc = full[::2, ::2, :]                              # (th, Wo, P)

        acc = jnp.maximum(acc + b2_ref[...], 0.0)

        # ---- Stage 3: project 1x1 conv + folded BN (+ fused shortcut).
        acc2d = acc.reshape(th * Wo, planes).astype(mxu_dtype)
        out = jnp.dot(acc2d, w3_ref[...], preferred_element_type=jnp.float32)
        out = out + b3_ref[...]

        if shortcut_kind != "none":                               # stride == 1 only
            xr_start = pl.multiple_of(t * th, th)
            x_rows = x_ref[0, pl.ds(xr_start, th), :, :].reshape(th * W, Cin)
            if shortcut_kind == "conv":
                sc = jnp.dot(x_rows.astype(mxu_dtype), ws_ref[...],
                             preferred_element_type=jnp.float32)
                out = out + sc + bs_ref[...]
            else:                                                 # identity
                out = out + x_rows.astype(jnp.float32)

        o_ref[0] = out.reshape(th, Wo, Cout).astype(o_ref.dtype)

    return kernel


# ----------------------------------------------------------------------------
# Block forward (wrapper)
# ----------------------------------------------------------------------------
def block_forward(x_nchw, params, stride, *, mxu_dtype=jnp.bfloat16):
    # NCHW (PyTorch interface) -> NHWC (channels on the 128-lane axis).
    x = jnp.transpose(x_nchw, (0, 2, 3, 1))
    N, H, W, Cin = x.shape
    planes = params["w1"].shape[1]
    Cout = params["w3"].shape[1]
    Ho = (H - 1) // stride + 1
    Wo = (W - 1) // stride + 1

    # Fold BN scale into conv weights on the host; keep biases separate (f32).
    s1, b1 = _fold_bn(*params["bn1"])
    s2, b2 = _fold_bn(*params["bn2"])
    s3, b3 = _fold_bn(*params["bn3"])
    w1 = (params["w1"] * s1[None, :]).astype(mxu_dtype)
    w2 = (params["w2"].reshape(9, planes) * s2[None, :]).astype(jnp.float32)
    w3 = (params["w3"] * s3[None, :]).astype(mxu_dtype)

    shortcut_kind = "none"
    if stride == 1:
        shortcut_kind = "conv" if "ws" in params else "identity"

    # Output-row tile: raise grid granularity (pipelining / v7x 2-TC sharding)
    # while keeping the whole padded expanded image resident in one small
    # VMEM scratch.
    th = Ho
    for cand in (32, 16, 8):
        if Ho % cand == 0 and Ho > cand:
            th = cand
            break
    T = Ho // th

    in_specs = [
        pl.BlockSpec((1, H, W, Cin), lambda n, t: (n, 0, 0, 0)),
        pl.BlockSpec((Cin, planes), lambda n, t: (0, 0)),
        pl.BlockSpec((1, planes), lambda n, t: (0, 0)),
        pl.BlockSpec((9, planes), lambda n, t: (0, 0)),
        pl.BlockSpec((1, planes), lambda n, t: (0, 0)),
        pl.BlockSpec((planes, Cout), lambda n, t: (0, 0)),
        pl.BlockSpec((1, Cout), lambda n, t: (0, 0)),
    ]
    call_args = [x, w1, b1.reshape(1, -1), w2, b2.reshape(1, -1),
                 w3, b3.reshape(1, -1)]

    if shortcut_kind == "conv":
        ss, bs = _fold_bn(*params["bns"])
        ws = (params["ws"] * ss[None, :]).astype(mxu_dtype)
        in_specs += [pl.BlockSpec((Cin, Cout), lambda n, t: (0, 0)),
                     pl.BlockSpec((1, Cout), lambda n, t: (0, 0))]
        call_args += [ws, bs.reshape(1, -1)]

    kernel = _make_block_kernel(H, W, Cin, planes, Cout, stride, th,
                                shortcut_kind, mxu_dtype)

    out = pl.pallas_call(
        kernel,
        out_shape=jax.ShapeDtypeStruct((N, Ho, Wo, Cout), x_nchw.dtype),
        grid=(N, T),
        in_specs=in_specs,
        out_specs=pl.BlockSpec((1, th, Wo, Cout), lambda n, t: (n, t, 0, 0)),
        scratch_shapes=[pltpu.VMEM((H + 2, W + 2, planes), jnp.float32)],
        compiler_params=pltpu.CompilerParams(
            # expand scratch is reused across row tiles -> t axis is arbitrary
            dimension_semantics=("parallel", "arbitrary"),
            # explicit scoped-VMEM budget; safe on v5e/v6e (128 MiB) and v7x (64 MiB)
            vmem_limit_bytes=32 * 1024 * 1024,
        ),
    )(*call_args)

    return jnp.transpose(out, (0, 3, 1, 2))  # back to NCHW


# ----------------------------------------------------------------------------
# Pure-JAX reference (inference-mode BN), used for a correctness check.
# ----------------------------------------------------------------------------
def _reference(x_nchw, params, stride):
    x = jnp.transpose(x_nchw, (0, 2, 3, 1)).astype(jnp.float32)
    s1, b1 = _fold_bn(*params["bn1"])
    s2, b2 = _fold_bn(*params["bn2"])
    s3, b3 = _fold_bn(*params["bn3"])

    e = jnp.maximum(jnp.einsum("nhwc,cp->nhwp", x, params["w1"]) * s1 + b1, 0.0)
    ep = jnp.pad(e, ((0, 0), (1, 1), (1, 1), (0, 0)))
    N, H, W, C = e.shape
    Ho = (H - 1) // stride + 1
    Wo = (W - 1) // stride + 1
    d = jnp.zeros((N, Ho, Wo, C), jnp.float32)
    for kh in range(3):
        for kw in range(3):
            patch = ep[:, kh:kh + (Ho - 1) * stride + 1:stride,
                       kw:kw + (Wo - 1) * stride + 1:stride, :]
            d = d + patch * params["w2"][kh, kw]
    d = jnp.maximum(d * s2 + b2, 0.0)
    out = jnp.einsum("nhwc,co->nhwo", d, params["w3"]) * s3 + b3
    if stride == 1:
        if "ws" in params:
            ss, bs = _fold_bn(*params["bns"])
            sc = jnp.einsum("nhwc,co->nhwo", x, params["ws"]) * ss + bs
        else:
            sc = x
        out = out + sc
    return jnp.transpose(out, (0, 3, 1, 2))


# ----------------------------------------------------------------------------
# Deterministic parameter construction + demo
# ----------------------------------------------------------------------------
def _bn_params(key, c):
    k1, k2, k3, k4 = jax.random.split(key, 4)
    gamma = 1.0 + 0.1 * jax.random.normal(k1, (c,), jnp.float32)
    beta = 0.1 * jax.random.normal(k2, (c,), jnp.float32)
    mean = 0.1 * jax.random.normal(k3, (c,), jnp.float32)
    var = jax.random.uniform(k4, (c,), jnp.float32, minval=0.5, maxval=1.5)
    return gamma, beta, mean, var


if __name__ == "__main__":
    key = jax.random.PRNGKey(0)
    keys = jax.random.split(key, 9)

    # Block config (small, consistent with the module's constructor)
    N, Cin, H, W = 2, 8, 16, 16
    out_planes, expansion, stride = 16, 3, 1
    planes = expansion * Cin  # 24

    params = {
        # conv1: PyTorch weight (planes, Cin, 1, 1) -> stored as (Cin, planes)
        "w1": 0.1 * jax.random.normal(keys[0], (Cin, planes), jnp.float32),
        "bn1": _bn_params(keys[1], planes),
        # conv2 (depthwise): PyTorch weight (planes, 1, 3, 3) -> (3, 3, planes)
        "w2": 0.1 * jax.random.normal(keys[2], (3, 3, planes), jnp.float32),
        "bn2": _bn_params(keys[3], planes),
        # conv3: PyTorch weight (out_planes, planes, 1, 1) -> (planes, out_planes)
        "w3": 0.1 * jax.random.normal(keys[4], (planes, out_planes), jnp.float32),
        "bn3": _bn_params(keys[5], out_planes),
    }
    if stride == 1 and Cin != out_planes:
        params["ws"] = 0.1 * jax.random.normal(keys[6], (Cin, out_planes), jnp.float32)
        params["bns"] = _bn_params(keys[7], out_planes)

    x = jax.random.normal(keys[8], (N, Cin, H, W), jnp.float32)  # NCHW input

    y = jax.block_until_ready(block_forward(x, params, stride))
    assert y.shape == (N, out_planes, H // stride, W // stride), y.shape
    assert y.dtype == jnp.float32

    y_ref = jax.block_until_ready(_reference(x, params, stride))
    max_err = float(jnp.max(jnp.abs(y - y_ref)))
    assert max_err < 5e-2, f"max abs err {max_err}"

    print("KERNEL_OK")
</pallas_src>

<mosaic_0001>
module attributes {stable_mosaic.version = 11 : i64} {
  func.func @kernel(%arg0: i32, %arg1: i32, %arg2: memref<1x16x16x8xf32, #tpu.memory_space<vmem>>, %arg3: memref<8x24xbf16, #tpu.memory_space<vmem>>, %arg4: memref<1x24xf32, #tpu.memory_space<vmem>>, %arg5: memref<9x24xf32, #tpu.memory_space<vmem>>, %arg6: memref<1x24xf32, #tpu.memory_space<vmem>>, %arg7: memref<24x16xbf16, #tpu.memory_space<vmem>>, %arg8: memref<1x16xf32, #tpu.memory_space<vmem>>, %arg9: memref<8x16xbf16, #tpu.memory_space<vmem>>, %arg10: memref<1x16xf32, #tpu.memory_space<vmem>>, %arg11: memref<1x8x16x16xf32, #tpu.memory_space<vmem>>, %arg12: memref<18x18x24xf32, #tpu.memory_space<vmem>>) attributes {dimension_semantics = [#tpu.dimension_semantics<parallel>, #tpu.dimension_semantics<arbitrary>], iteration_bounds = array<i64: 2, 2>, scalar_prefetch = 0 : i64, scratch_operands = 1 : i64, tpu.core_type = #tpu.core_type<tc>, window_params = [{transform_indices = @transform_0, window_bounds = array<i64: 1, 16, 16, 8>}, {pipeline_mode = #tpu.pipeline_mode<synchronous>, transform_indices = @transform_1, window_bounds = array<i64: 8, 24>}, {pipeline_mode = #tpu.pipeline_mode<synchronous>, transform_indices = @transform_2, window_bounds = array<i64: 1, 24>}, {pipeline_mode = #tpu.pipeline_mode<synchronous>, transform_indices = @transform_3, window_bounds = array<i64: 9, 24>}, {pipeline_mode = #tpu.pipeline_mode<synchronous>, transform_indices = @transform_4, window_bounds = array<i64: 1, 24>}, {pipeline_mode = #tpu.pipeline_mode<synchronous>, transform_indices = @transform_5, window_bounds = array<i64: 24, 16>}, {pipeline_mode = #tpu.pipeline_mode<synchronous>, transform_indices = @transform_6, window_bounds = array<i64: 1, 16>}, {pipeline_mode = #tpu.pipeline_mode<synchronous>, transform_indices = @transform_7, window_bounds = array<i64: 8, 16>}, {pipeline_mode = #tpu.pipeline_mode<synchronous>, transform_indices = @transform_8, window_bounds = array<i64: 1, 16>}, {transform_indices = @transform_9, window_bounds = array<i64: 1, 8, 16, 16>}]} {
    %c0_i32 = arith.constant 0 : i32
    %0 = arith.cmpi eq, %arg1, %c0_i32 : i32
    %1 = arith.extui %0 : i1 to i32
    %c0_i32_0 = arith.constant 0 : i32
    %2 = arith.cmpi ne, %1, %c0_i32_0 : i32
    scf.if %2 {
      %cst_33 = arith.constant 0.000000e+00 : f32
      %101 = vector.broadcast %cst_33 : f32 to vector<18x18x24xf32>
      %c0_34 = arith.constant 0 : index
      %c0_35 = arith.constant 0 : index
      %c0_36 = arith.constant 0 : index
      %102 = vector.load %arg12[%c0_34, %c0_35, %c0_36] : memref<18x18x24xf32, #tpu.memory_space<vmem>>, vector<18x18x24xf32>
      tpu.vector_store %arg12[%c0_34, %c0_35, %c0_36], %101 {strides = array<i32>} : memref<18x18x24xf32, #tpu.memory_space<vmem>>, vector<18x18x24xf32>,
      %c0_37 = arith.constant 0 : index
      %c0_38 = arith.constant 0 : index
      %c0_39 = arith.constant 0 : index
      %c0_40 = arith.constant 0 : index
      %103 = vector.load %arg2[%c0_37, %c0_38, %c0_39, %c0_40] : memref<1x16x16x8xf32, #tpu.memory_space<vmem>>, vector<1x16x16x8xf32>
      %104 = vector.shape_cast %103 : vector<1x16x16x8xf32> to vector<16x16x8xf32>
      %105 = vector.shape_cast %104 : vector<16x16x8xf32> to vector<256x8xf32>
      %106 = arith.truncf %105 : vector<256x8xf32> to vector<256x8xbf16>
      %c0_41 = arith.constant 0 : index
      %c0_42 = arith.constant 0 : index
      %107 = vector.load %arg3[%c0_41, %c0_42] : memref<8x24xbf16, #tpu.memory_space<vmem>>, vector<8x24xbf16>
      %cst_43 = arith.constant dense<0.000000e+00> : vector<256x24xf32>
      %108 = tpu.matmul %106, %107, %cst_43 {dimension_numbers = #tpu.dot_dimension_numbers<[1], [0], [0], [1], [0, 0, 1, 1], [], []>} : vector<256x8xbf16>, vector<8x24xbf16>, vector<256x24xf32> -> vector<256x24xf32>
      %c0_44 = arith.constant 0 : index
      %c0_45 = arith.constant 0 : index
      %109 = vector.load %arg4[%c0_44, %c0_45] : memref<1x24xf32, #tpu.memory_space<vmem>>, vector<1x24xf32>
      %110 = vector.broadcast %109 : vector<1x24xf32> to vector<256x24xf32>
      %111 = arith.addf %108, %110 : vector<256x24xf32>
      %cst_46 = arith.constant 0.000000e+00 : f32
      %112 = vector.broadcast %cst_46 : f32 to vector<256x24xf32>
      %113 = arith.maximumf %111, %112 : vector<256x24xf32>
      %114 = vector.shape_cast %113 : vector<256x24xf32> to vector<16x16x24xf32>
      %c1_47 = arith.constant 1 : index
      %c1_48 = arith.constant 1 : index
      %c0_49 = arith.constant 0 : index
      %115 = vector.load %arg12[%c1_47, %c1_48, %c0_49] : memref<18x18x24xf32, #tpu.memory_space<vmem>>, vector<16x16x24xf32>
      tpu.vector_store %arg12[%c1_47, %c1_48, %c0_49], %114 {strides = array<i32>} : memref<18x18x24xf32, #tpu.memory_space<vmem>>, vector<16x16x24xf32>,
    } else {
    }
    %c8_i32 = arith.constant 8 : i32
    %3 = arith.muli %arg1, %c8_i32 : i32
    %4 = tpu.assume_multiple %3, 8 : i32
    %5 = arith.index_cast %4 : i32 to index
    %c0 = arith.constant 0 : index
    %c0_1 = arith.constant 0 : index
    %6 = vector.load %arg12[%5, %c0, %c0_1] : memref<18x18x24xf32, #tpu.memory_space<vmem>>, vector<10x18x24xf32>
    %cst = arith.constant 0.000000e+00 : f32
    %7 = vector.broadcast %cst : f32 to vector<8x16x24xf32>
    %8 = vector.extract_strided_slice %6 {offsets = [0, 0, 0], sizes = [8, 16, 24], strides = [1, 1, 1]} : vector<10x18x24xf32> to vector<8x16x24xf32>
    %c0_2 = arith.constant 0 : index
    %c0_3 = arith.constant 0 : index
    %9 = vector.load %arg5[%c0_2, %c0_3] : memref<9x24xf32, #tpu.memory_space<vmem>>, vector<1x24xf32>
    %10 = vector.shape_cast %9 : vector<1x24xf32> to vector<24xf32>
    %11 = vector.shape_cast %10 : vector<24xf32> to vector<1x1x24xf32>
    %12 = vector.broadcast %11 : vector<1x1x24xf32> to vector<8x16x24xf32>
    %13 = arith.mulf %8, %12 : vector<8x16x24xf32>
    %14 = arith.addf %7, %13 : vector<8x16x24xf32>
    %15 = vector.extract_strided_slice %6 {offsets = [0, 1, 0], sizes = [8, 16, 24], strides = [1, 1, 1]} : vector<10x18x24xf32> to vector<8x16x24xf32>
    %c1 = arith.constant 1 : index
    %c0_4 = arith.constant 0 : index
    %16 = vector.load %arg5[%c1, %c0_4] : memref<9x24xf32, #tpu.memory_space<vmem>>, vector<1x24xf32>
    %17 = vector.shape_cast %16 : vector<1x24xf32> to vector<24xf32>
    %18 = vector.shape_cast %17 : vector<24xf32> to vector<1x1x24xf32>
    %19 = vector.broadcast %18 : vector<1x1x24xf32> to vector<8x16x24xf32>
    %20 = arith.mulf %15, %19 : vector<8x16x24xf32>
    %21 = arith.addf %14, %20 : vector<8x16x24xf32>
    %22 = vector.extract_strided_slice %6 {offsets = [0, 2, 0], sizes = [8, 16, 24], strides = [1, 1, 1]} : vector<10x18x24xf32> to vector<8x16x24xf32>
    %c2 = arith.constant 2 : index
    %c0_5 = arith.constant 0 : index
    %23 = vector.load %arg5[%c2, %c0_5] : memref<9x24xf32, #tpu.memory_space<vmem>>, vector<1x24xf32>
    %24 = vector.shape_cast %23 : vector<1x24xf32> to vector<24xf32>
    %25 = vector.shape_cast %24 : vector<24xf32> to vector<1x1x24xf32>
    %26 = vector.broadcast %25 : vector<1x1x24xf32> to vector<8x16x24xf32>
    %27 = arith.mulf %22, %26 : vector<8x16x24xf32>
    %28 = arith.addf %21, %27 : vector<8x16x24xf32>
    %29 = vector.extract_strided_slice %6 {offsets = [1, 0, 0], sizes = [8, 16, 24], strides = [1, 1, 1]} : vector<10x18x24xf32> to vector<8x16x24xf32>
    %c3 = arith.constant 3 : index
    %c0_6 = arith.constant 0 : index
    %30 = vector.load %arg5[%c3, %c0_6] : memref<9x24xf32, #tpu.memory_space<vmem>>, vector<1x24xf32>
    %31 = vector.shape_cast %30 : vector<1x24xf32> to vector<24xf32>
    %32 = vector.shape_cast %31 : vector<24xf32> to vector<1x1x24xf32>
    %33 = vector.broadcast %32 : vector<1x1x24xf32> to vector<8x16x24xf32>
    %34 = arith.mulf %29, %33 : vector<8x16x24xf32>
    %35 = arith.addf %28, %34 : vector<8x16x24xf32>
    %36 = vector.extract_strided_slice %6 {offsets = [1, 1, 0], sizes = [8, 16, 24], strides = [1, 1, 1]} : vector<10x18x24xf32> to vector<8x16x24xf32>
    %c4 = arith.constant 4 : index
    %c0_7 = arith.constant 0 : index
    %37 = vector.load %arg5[%c4, %c0_7] : memref<9x24xf32, #tpu.memory_space<vmem>>, vector<1x24xf32>
    %38 = vector.shape_cast %37 : vector<1x24xf32> to vector<24xf32>
    %39 = vector.shape_cast %38 : vector<24xf32> to vector<1x1x24xf32>
    %40 = vector.broadcast %39 : vector<1x1x24xf32> to vector<8x16x24xf32>
    %41 = arith.mulf %36, %40 : vector<8x16x24xf32>
    %42 = arith.addf %35, %41 : vector<8x16x24xf32>
    %43 = vector.extract_strided_slice %6 {offsets = [1, 2, 0], sizes = [8, 16, 24], strides = [1, 1, 1]} : vector<10x18x24xf32> to vector<8x16x24xf32>
    %c5 = arith.constant 5 : index
    %c0_8 = arith.constant 0 : index
    %44 = vector.load %arg5[%c5, %c0_8] : memref<9x24xf32, #tpu.memory_space<vmem>>, vector<1x24xf32>
    %45 = vector.shape_cast %44 : vector<1x24xf32> to vector<24xf32>
    %46 = vector.shape_cast %45 : vector<24xf32> to vector<1x1x24xf32>
    %47 = vector.broadcast %46 : vector<1x1x24xf32> to vector<8x16x24xf32>
    %48 = arith.mulf %43, %47 : vector<8x16x24xf32>
    %49 = arith.addf %42, %48 : vector<8x16x24xf32>
    %50 = vector.extract_strided_slice %6 {offsets = [2, 0, 0], sizes = [8, 16, 24], strides = [1, 1, 1]} : vector<10x18x24xf32> to vector<8x16x24xf32>
    %c6 = arith.constant 6 : index
    %c0_9 = arith.constant 0 : index
    %51 = vector.load %arg5[%c6, %c0_9] : memref<9x24xf32, #tpu.memory_space<vmem>>, vector<1x24xf32>
    %52 = vector.shape_cast %51 : vector<1x24xf32> to vector<24xf32>
    %53 = vector.shape_cast %52 : vector<24xf32> to vector<1x1x24xf32>
    %54 = vector.broadcast %53 : vector<1x1x24xf32> to vector<8x16x24xf32>
    %55 = arith.mulf %50, %54 : vector<8x16x24xf32>
    %56 = arith.addf %49, %55 : vector<8x16x24xf32>
    %57 = vector.extract_strided_slice %6 {offsets = [2, 1, 0], sizes = [8, 16, 24], strides = [1, 1, 1]} : vector<10x18x24xf32> to vector<8x16x24xf32>
    %c7 = arith.constant 7 : index
    %c0_10 = arith.constant 0 : index
    %58 = vector.load %arg5[%c7, %c0_10] : memref<9x24xf32, #tpu.memory_space<vmem>>, vector<1x24xf32>
    %59 = vector.shape_cast %58 : vector<1x24xf32> to vector<24xf32>
    %60 = vector.shape_cast %59 : vector<24xf32> to vector<1x1x24xf32>
    %61 = vector.broadcast %60 : vector<1x1x24xf32> to vector<8x16x24xf32>
    %62 = arith.mulf %57, %61 : vector<8x16x24xf32>
    %63 = arith.addf %56, %62 : vector<8x16x24xf32>
    %64 = vector.extract_strided_slice %6 {offsets = [2, 2, 0], sizes = [8, 16, 24], strides = [1, 1, 1]} : vector<10x18x24xf32> to vector<8x16x24xf32>
    %c8 = arith.constant 8 : index
    %c0_11 = arith.constant 0 : index
    %65 = vector.load %arg5[%c8, %c0_11] : memref<9x24xf32, #tpu.memory_space<vmem>>, vector<1x24xf32>
    %66 = vector.shape_cast %65 : vector<1x24xf32> to vector<24xf32>
    %67 = vector.shape_cast %66 : vector<24xf32> to vector<1x1x24xf32>
    %68 = vector.broadcast %67 : vector<1x1x24xf32> to vector<8x16x24xf32>
    %69 = arith.mulf %64, %68 : vector<8x16x24xf32>
    %70 = arith.addf %63, %69 : vector<8x16x24xf32>
    %c0_12 = arith.constant 0 : index
    %c0_13 = arith.constant 0 : index
    %71 = vector.load %arg6[%c0_12, %c0_13] : memref<1x24xf32, #tpu.memory_space<vmem>>, vector<1x24xf32>
    %72 = vector.shape_cast %71 : vector<1x24xf32> to vector<1x1x24xf32>
    %73 = vector.broadcast %72 : vector<1x1x24xf32> to vector<8x16x24xf32>
    %74 = arith.addf %70, %73 : vector<8x16x24xf32>
    %cst_14 = arith.constant 0.000000e+00 : f32
    %75 = vector.broadcast %cst_14 : f32 to vector<8x16x24xf32>
    %76 = arith.maximumf %74, %75 : vector<8x16x24xf32>
    %77 = vector.shape_cast %76 : vector<8x16x24xf32> to vector<128x24xf32>
    %78 = arith.truncf %77 : vector<128x24xf32> to vector<128x24xbf16>
    %c0_15 = arith.constant 0 : index
    %c0_16 = arith.constant 0 : index
    %79 = vector.load %arg7[%c0_15, %c0_16] : memref<24x16xbf16, #tpu.memory_space<vmem>>, vector<24x16xbf16>
    %cst_17 = arith.constant dense<0.000000e+00> : vector<128x16xf32>
    %80 = tpu.matmul %78, %79, %cst_17 {dimension_numbers = #tpu.dot_dimension_numbers<[1], [0], [0], [1], [0, 0, 1, 1], [], []>} : vector<128x24xbf16>, vector<24x16xbf16>, vector<128x16xf32> -> vector<128x16xf32>
    %c0_18 = arith.constant 0 : index
    %c0_19 = arith.constant 0 : index
    %81 = vector.load %arg8[%c0_18, %c0_19] : memref<1x16xf32, #tpu.memory_space<vmem>>, vector<1x16xf32>
    %82 = vector.broadcast %81 : vector<1x16xf32> to vector<128x16xf32>
    %83 = arith.addf %80, %82 : vector<128x16xf32>
    %c8_i32_20 = arith.constant 8 : i32
    %84 = arith.muli %arg1, %c8_i32_20 : i32
    %85 = tpu.assume_multiple %84, 8 : i32
    %c0_21 = arith.constant 0 : index
    %86 = arith.index_cast %85 : i32 to index
    %c0_22 = arith.constant 0 : index
    %c0_23 = arith.constant 0 : index
    %87 = vector.load %arg2[%c0_21, %86, %c0_22, %c0_23] : memref<1x16x16x8xf32, #tpu.memory_space<vmem>>, vector<1x8x16x8xf32>
    %88 = vector.shape_cast %87 : vector<1x8x16x8xf32> to vector<8x16x8xf32>
    %89 = vector.shape_cast %88 : vector<8x16x8xf32> to vector<128x8xf32>
    %90 = arith.truncf %89 : vector<128x8xf32> to vector<128x8xbf16>
    %c0_24 = arith.constant 0 : index
    %c0_25 = arith.constant 0 : index
    %91 = vector.load %arg9[%c0_24, %c0_25] : memref<8x16xbf16, #tpu.memory_space<vmem>>, vector<8x16xbf16>
    %cst_26 = arith.constant dense<0.000000e+00> : vector<128x16xf32>
    %92 = tpu.matmul %90, %91, %cst_26 {dimension_numbers = #tpu.dot_dimension_numbers<[1], [0], [0], [1], [0, 0, 1, 1], [], []>} : vector<128x8xbf16>, vector<8x16xbf16>, vector<128x16xf32> -> vector<128x16xf32>
    %93 = arith.addf %83, %92 : vector<128x16xf32>
    %c0_27 = arith.constant 0 : index
    %c0_28 = arith.constant 0 : index
    %94 = vector.load %arg10[%c0_27, %c0_28] : memref<1x16xf32, #tpu.memory_space<vmem>>, vector<1x16xf32>
    %95 = vector.broadcast %94 : vector<1x16xf32> to vector<128x16xf32>
    %96 = arith.addf %93, %95 : vector<128x16xf32>
    %97 = vector.shape_cast %96 : vector<128x16xf32> to vector<8x16x16xf32>
    %c0_29 = arith.constant 0 : index
    %c0_30 = arith.constant 0 : index
    %c0_31 = arith.constant 0 : index
    %c0_32 = arith.constant 0 : index
    %98 = vector.load %arg11[%c0_29, %c0_30, %c0_31, %c0_32] : memref<1x8x16x16xf32, #tpu.memory_space<vmem>>, vector<1x8x16x16xf32>
    %99 = vector.shape_cast %98 : vector<1x8x16x16xf32> to vector<8x16x16xf32>
    %100 = vector.shape_cast %97 : vector<8x16x16xf32> to vector<1x8x16x16xf32>
    tpu.vector_store %arg11[%c0_29, %c0_30, %c0_31, %c0_32], %100 {strides = array<i32>} : memref<1x8x16x16xf32, #tpu.memory_space<vmem>>, vector<1x8x16x16xf32>,
    return
  }
  func.func @transform_0(%arg0: i32, %arg1: i32) -> (i32, i32, i32, i32) {
    %c0_i32 = arith.constant 0 : i32
    %c0_i32_0 = arith.constant 0 : i32
    %c0_i32_1 = arith.constant 0 : i32
    %c0_i32_2 = arith.constant 0 : i32
    return %arg0, %c0_i32, %c0_i32_0, %c0_i32_1 : i32, i32, i32, i32
  }
  func.func @transform_1(%arg0: i32, %arg1: i32) -> (i32, i32) {
    %c0_i32 = arith.constant 0 : i32
    %c0_i32_0 = arith.constant 0 : i32
    %c0_i32_1 = arith.constant 0 : i32
    return %c0_i32, %c0_i32_0 : i32, i32
  }
  func.func @transform_2(%arg0: i32, %arg1: i32) -> (i32, i32) {
    %c0_i32 = arith.constant 0 : i32
    %c0_i32_0 = arith.constant 0 : i32
    %c0_i32_1 = arith.constant 0 : i32
    return %c0_i32, %c0_i32_0 : i32, i32
  }
  func.func @transform_3(%arg0: i32, %arg1: i32) -> (i32, i32) {
    %c0_i32 = arith.constant 0 : i32
    %c0_i32_0 = arith.constant 0 : i32
    %c0_i32_1 = arith.constant 0 : i32
    return %c0_i32, %c0_i32_0 : i32, i32
  }
  func.func @transform_4(%arg0: i32, %arg1: i32) -> (i32, i32) {
    %c0_i32 = arith.constant 0 : i32
    %c0_i32_0 = arith.constant 0 : i32
    %c0_i32_1 = arith.constant 0 : i32
    return %c0_i32, %c0_i32_0 : i32, i32
  }
  func.func @transform_5(%arg0: i32, %arg1: i32) -> (i32, i32) {
    %c0_i32 = arith.constant 0 : i32
    %c0_i32_0 = arith.constant 0 : i32
    %c0_i32_1 = arith.constant 0 : i32
    return %c0_i32, %c0_i32_0 : i32, i32
  }
  func.func @transform_6(%arg0: i32, %arg1: i32) -> (i32, i32) {
    %c0_i32 = arith.constant 0 : i32
    %c0_i32_0 = arith.constant 0 : i32
    %c0_i32_1 = arith.constant 0 : i32
    return %c0_i32, %c0_i32_0 : i32, i32
  }
  func.func @transform_7(%arg0: i32, %arg1: i32) -> (i32, i32) {
    %c0_i32 = arith.constant 0 : i32
    %c0_i32_0 = arith.constant 0 : i32
    %c0_i32_1 = arith.constant 0 : i32
    return %c0_i32, %c0_i32_0 : i32, i32
  }
  func.func @transform_8(%arg0: i32, %arg1: i32) -> (i32, i32) {
    %c0_i32 = arith.constant 0 : i32
    %c0_i32_0 = arith.constant 0 : i32
    %c0_i32_1 = arith.constant 0 : i32
    return %c0_i32, %c0_i32_0 : i32, i32
  }
  func.func @transform_9(%arg0: i32, %arg1: i32) -> (i32, i32, i32, i32) {
    %c0_i32 = arith.constant 0 : i32
    %c0_i32_0 = arith.constant 0 : i32
    %c0_i32_1 = arith.constant 0 : i32
    return %arg0, %arg1, %c0_i32, %c0_i32_0 : i32, i32, i32, i32
  }
}

</mosaic_0001>

<bundles_post_ra>
// kernel: tpu_custom_call.1
= control target key start
LH: loop header
LB: loop body
LE: loop exit
PB: predicated region body
PF: predicated region fallthrough
CT: control target
= control target key end

     0   :  { %14 = vsyncpa [#allocation4], 0  ;;  %s3386_s0 = inlined_call_operand.vmem [shape: f32[2,16,16,8], index: 0, kind: input, shape index: {}]   ;;  %s3387_s1 = inlined_call_operand.vmem [shape: bf16[8,24], index: 1, kind: input, shape index: {}]   ;;  %s3388_s2 = inlined_call_operand.vmem [shape: f32[1,24], index: 2, kind: input, shape index: {}]   ;;  %s3389_s3 = inlined_call_operand.vmem [shape: f32[9,24], index: 3, kind: input, shape index: {}]   ;;  %s3390_s4 = inlined_call_operand.vmem [shape: f32[1,24], index: 4, kind: input, shape index: {}]   ;;  %s3391_s5 = inlined_call_operand.vmem [shape: bf16[24,16], index: 5, kind: input, shape index: {}]   ;;  %s3392_s6 = inlined_call_operand.vmem [shape: f32[1,16], index: 6, kind: input, shape index: {}]   ;;  %s3393_s7 = inlined_call_operand.vmem [shape: bf16[8,16], index: 7, kind: input, shape index: {}]   ;;  %s3394_s8 = inlined_call_operand.vmem [shape: f32[1,16], index: 8, kind: input, shape index: {}]   ;;  %s3395_s9 = inlined_call_operand.hbm [shape: f32[2,16,16,16], index: 9, kind: output, shape index: {}]  }
   0x1   :  { %16 = vsyncpa [#allocation4 + $0x1], 0  ;;  %s2241_s30 = smov 0   ;;  %s2243_s10 = smov 0  }
   0x2   :  { %s2245_s11 = smov 0   ;;  %s2247_s12 = smov 0  }
   0x3   :  { %s2249_s13 = smov 0   ;;  %s2251_s14 = smov 0  }
   0x4   :  { %s2253_s15 = smov 0   ;;  %s2255_s16 = smov 0  }
   0x5 LB: > { %3399 = sst [smem:[#allocation6_spill]] %s2178_s14  ;;  %s1930_s17 = sadd.s32 4294967295, %s2186_s16   ;;  %s2186_s16 = sphi %s2255_s16, %s22_s16   ;;  %s2182_s15 = sphi %s2253_s15, %s3411_s15   ;;  %s2178_s14 = sphi %s2251_s14, %s3405_s14   ;;  %s2174_s13 = sphi %s2249_s13, %s3410_s13   ;;  %s2170_s12 = sphi %s2247_s12, %s3404_s12   ;;  %s2166_s11 = sphi %s2245_s11, %s3409_s11   ;;  %s2162_s10 = sphi %s2243_s10, %s3408_s10   ;;  %s2158_s30 = sphi %s2241_s30, %s3407_s30  }
   0x6   : > { %s1931_s18 = sadd.s32 4294967294, %s2186_s16   ;;  %s31_s19 = sadd.s32 1, %s2178_s14 }
   0x7   : > { %p32_p0 = scmp.ge.s32.totalorder %s31_s19, 2  ;;  %s34_s20 = sadd.s32 1, %s2182_s15 }
   0x8   : > { %p247_p1 = scmp.ne.s32.totalorder %s2166_s11, %s2162_s10  ;;  %p248_p2 = scmp.eq.s32.totalorder %s1930_s17, 3 }
   0x9   : > { %s3413_s19 = smov (%p32_p0, %s31_s19), 0  ;;  %s3415_s20 = smov (!%p32_p0, %s34_s20), %s2182_s15 }
   0xa   : > { %3400 = sst [smem:[#allocation7_spill]] %s3413_s19  ;;  %s233_s21 = ssub.s32 %s2178_s14, %s3413_s19 }
   0xb   : > { %p2292_p3 = por %p248_p2, %p247_p1  ;;  %p36_p4 = scmp.ge.s32.totalorder %s3415_s20, 2 }
   0xc   : > { %p253_p5 = scmp.ne.s32.totalorder %s2162_s10, %s2158_s30  ;;  %p254_p6 = scmp.eq.s32.totalorder %s1931_s18, 3 }
   0xd   : > { %p1934_p7 = scmp.ge.s32.totalorder %s2186_s16, 1  ;;  %s3417_s20 = smov (%p36_p4, %s3415_s20), 0 }
   0xe   : > { %3402 = sst [smem:[#allocation8_spill]] %s3417_s20  ;;  %p2301_p8 = por %p254_p6, %p253_p5 }
   0xf   : > { %p304_p9 = scmp.lt.s32.totalorder %s2186_s16, 5  ;;  %s232_s24 = ssub.s32 %s2182_s15, %s3417_s20 }
  0x10   : > { %s237_s25 = sadd.s32 1, %s2166_s11  ;;  %s234_s26 = sor.u32 %s233_s21, %s232_s24 }
  0x11   : > { %p305_p10 = pnand %p1934_p7, %p304_p9  ;;  %p235_p11 = scmp.eq.s32.totalorder %s234_s26, 0 }
  0x12   : > { %s337_s28 = sand.u32 (!%p305_p10), 1, %s2162_s10   ;;  %p340_p12 = scmp.lt.s32.totalorder (!%p305_p10), %s2174_s13, 1 }
  0x13   : > { %s2310_s27 = scalar_select %p235_p11, %s2166_s11, %s237_s25  }
  0x14   : > { %308 = sbr.rel (%p305_p10) target bundleno = 548 (0x224), region = 56  ;;  %s1935_s29 = sshll.u32 (!%p305_p10), %s337_s28, 7 }
  0x15   : > { %s2322_s21 = scalar_lea.vmem (!%p305_p10), [#allocation3], %s1935_s29  ;;  %p1938_p13 = scmp.ne.s32.totalorder (!%p305_p10), %s2170_s12, 0 }
  0x19   : > { %s341_s17 = scalar_select %p340_p12, %s2174_s13, 1 }
  0x1a   : > { %350 = sbr.rel (%p1938_p13) target bundleno = 231 (0xe7), region = 60 }
  0x1b   : > { %s1985_s18 = sshll.u32 %s341_s17, 8 }
  0x1c   : > { %s2320_s20 = scalar_lea.vmem %s3386_s0, %s1985_s18 }
  0x1f   : > { %v455_v0 = vld [vmem:[%s3387_s1] sm:$0xf]  ;;  %vm509_vm0 = vcmask 1043456   ;;  %v408_v2 = vld [vmem:[%s2320_s20 + $0x8] sm:$0xff]  ;;  %vm460_vm1 = vcmask 64512   ;;  %v409_v14 = vld [vmem:[%s2320_s20 + $0x10] sm:$0xff] }
  0x20   : > { %v407_v1 = vld [vmem:[%s2320_s20] sm:$0xff]  ;;  %v511_v3 = vsel %vm509_vm0, %v455_v0, 0  ;;  %v416_v6 = vld [vmem:[%s2320_s20 + $0x48] sm:$0xff]  ;;  %v410_v15 = vld [vmem:[%s2320_s20 + $0x18] sm:$0xff]  ;;  %vm351_vm2 = vcmask 195584   ;;  %v2188_v26 = vmov 0.0  }
  0x21   : > { %v439_v4 = vpack.c.bf16 %v408_v2, %v407_v1  ;;  %v415_v5 = vld [vmem:[%s2320_s20 + $0x40] sm:$0xff]  ;;  %520 = vmatpush.bf16.msra.mxu0 %v511_v3  ;;  %1989 = vmatpush.bf16.msra.mxu1 %v511_v3  ;;  %v424_v9 = vld [vmem:[%s2320_s20 + $0x88] sm:$0xff]  ;;  %v417_v16 = vld [vmem:[%s2320_s20 + $0x50] sm:$0xff]  ;;  %v440_v22 = vpack.c.bf16 %v410_v15, %v409_v14  ;;  %352 = vst.msk [vmem:[#allocation2] sm:$0xff] %vm351_vm2, %v2188_v26  ;;  %vm354_vm3 = vcmask 189440  }
  0x22   : > { %v423_v7 = vld [vmem:[%s2320_s20 + $0x80] sm:$0xff]  ;;  %v443_v8 = vpack.c.bf16 %v416_v6, %v415_v5  ;;  %v432_v11 = vld [vmem:[%s2320_s20 + $0xc8] sm:$0xff]  ;;  %1990 = vmatpush.bf16.msra.mxu2 %v511_v3  ;;  %1991 = vmatpush.bf16.msra.mxu3 %v511_v3  ;;  %v418_v17 = vld [vmem:[%s2320_s20 + $0x58] sm:$0xff]  ;;  %353 = vst.msk [vmem:[#allocation2 + $0x8] sm:$0xff] %vm351_vm2, %v2188_v26 }
  0x23   : > { %v431_v10 = vld [vmem:[%s2320_s20 + $0xc0] sm:$0xff]  ;;  %v447_v12 = vpack.c.bf16 %v424_v9, %v423_v7  ;;  %v425_v18 = vld [vmem:[%s2320_s20 + $0x90] sm:$0xff]  ;;  %v426_v19 = vld [vmem:[%s2320_s20 + $0x98] sm:$0xff]  ;;  %v444_v23 = vpack.c.bf16 %v418_v17, %v417_v16  ;;  %356 = vst.msk [vmem:[#allocation2 + $0x18] sm:$0xff] %vm351_vm2, %v2188_v26 }
  0x24   : > { %v451_v13 = vpack.c.bf16 %v432_v11, %v431_v10  ;;  %1939 = vmatmul.msk.bf16.vlgmr.msra.gmra.mxu0 %vm460_vm1, %v439_v4  ;;  %1943 = vmatmul.msk.bf16.vlgmr.msra.gmra.mxu1 %vm460_vm1, %v443_v8  ;;  %v433_v20 = vld [vmem:[%s2320_s20 + $0xd0] sm:$0xff]  ;;  %v434_v21 = vld [vmem:[%s2320_s20 + $0xd8] sm:$0xff]  ;;  %v448_v24 = vpack.c.bf16 %v426_v19, %v425_v18  ;;  %357 = vst.msk [vmem:[#allocation2 + $0x20] sm:$0xff] %vm351_vm2, %v2188_v26  ;;  %v411_v27 = vld [vmem:[%s2320_s20 + $0x20] sm:$0xff] }
  0x25   : > { %1947 = vmatmul.msk.bf16.vlgmr.msra.gmra.mxu2 %vm460_vm1, %v447_v12  ;;  %v452_v25 = vpack.c.bf16 %v434_v21, %v433_v20  ;;  %404 = vst.msk [vmem:[#allocation2 + $0x198] sm:$0xff] %vm351_vm2, %v2188_v26  ;;  %v412_v28 = vld [vmem:[%s2320_s20 + $0x28] sm:$0xff]  ;;  %v419_v29 = vld [vmem:[%s2320_s20 + $0x60] sm:$0xff]  ;;  %v413_v39 = vld [vmem:[%s2320_s20 + $0x30] sm:$0xff] }
  0x26   : > { %1951 = vmatmul.msk.bf16.vlgmr.msra.gmra.mxu3 %vm460_vm1, %v451_v13  ;;  %405 = vst.msk [vmem:[#allocation2 + $0x1a0] sm:$0xff] %vm351_vm2, %v2188_v26  ;;  %v420_v30 = vld [vmem:[%s2320_s20 + $0x68] sm:$0xff]  ;;  %v427_v31 = vld [vmem:[%s2320_s20 + $0xa0] sm:$0xff]  ;;  %v441_v35 = vpack.c.bf16 %v412_v28, %v411_v27  ;;  %v414_v40 = vld [vmem:[%s2320_s20 + $0x38] sm:$0xff] }
  0x27   : > { %359 = vst.msk [vmem:[#allocation2 + $0x30] sm:$0xff] %vm351_vm2, %v2188_v26  ;;  %v428_v32 = vld [vmem:[%s2320_s20 + $0xa8] sm:$0xff]  ;;  %v435_v33 = vld [vmem:[%s2320_s20 + $0xe0] sm:$0xff]  ;;  %v445_v36 = vpack.c.bf16 %v420_v30, %v419_v29  ;;  %v421_v41 = vld [vmem:[%s2320_s20 + $0x70] sm:$0xff]  ;;  %v442_v47 = vpack.c.bf16 %v414_v40, %v413_v39 }
  0x28   : > { %360 = vst.msk [vmem:[#allocation2 + $0x38] sm:$0xff] %vm351_vm2, %v2188_v26  ;;  %v436_v34 = vld [vmem:[%s2320_s20 + $0xe8] sm:$0xff]  ;;  %v449_v37 = vpack.c.bf16 %v428_v32, %v427_v31  ;;  %v422_v42 = vld [vmem:[%s2320_s20 + $0x78] sm:$0xff]  ;;  %v429_v43 = vld [vmem:[%s2320_s20 + $0xb0] sm:$0xff] }
  0x29   : > { %362 = vst.msk [vmem:[#allocation2 + $0x48] sm:$0xff] %vm351_vm2, %v2188_v26  ;;  %v453_v38 = vpack.c.bf16 %v436_v34, %v435_v33  ;;  %v430_v44 = vld [vmem:[%s2320_s20 + $0xb8] sm:$0xff]  ;;  %v437_v45 = vld [vmem:[%s2320_s20 + $0xf0] sm:$0xff]  ;;  %v446_v48 = vpack.c.bf16 %v422_v42, %v421_v41  ;;  %v2481_v51 = vld [vmem:[%s3388_s2] ss:$0 sm:$0xff] }
  0x2a   : > { %363 = vst.msk [vmem:[#allocation2 + $0x50] sm:$0xff] %vm351_vm2, %v2188_v26  ;;  %v438_v46 = vld [vmem:[%s2320_s20 + $0xf8] sm:$0xff]  ;;  %v450_v49 = vpack.c.bf16 %v430_v44, %v429_v43 }
  0x2b   : > { %365 = vst.msk [vmem:[#allocation2 + $0x60] sm:$0xff] %vm351_vm2, %v2188_v26  ;;  %v454_v50 = vpack.c.bf16 %v438_v46, %v437_v45 }
  0x2c   : > { %366 = vst.msk [vmem:[#allocation2 + $0x68] sm:$0xff] %vm351_vm2, %v2188_v26 }
  0x2d   : > { %368 = vst.msk [vmem:[#allocation2 + $0x78] sm:$0xff] %vm351_vm2, %v2188_v26 }
  0x2e   : > { %369 = vst.msk [vmem:[#allocation2 + $0x80] sm:$0xff] %vm351_vm2, %v2188_v26 }
  0x2f   : > { %371 = vst.msk [vmem:[#allocation2 + $0x90] sm:$0xff] %vm351_vm2, %v2188_v26 }
  0x30   : > { %372 = vst.msk [vmem:[#allocation2 + $0x98] sm:$0xff] %vm351_vm2, %v2188_v26 }
  0x31   : > { %374 = vst.msk [vmem:[#allocation2 + $0xa8] sm:$0xff] %vm351_vm2, %v2188_v26 }
  0x32   : > { %375 = vst.msk [vmem:[#allocation2 + $0xb0] sm:$0xff] %vm351_vm2, %v2188_v26 }
  0x33   : > { %377 = vst.msk [vmem:[#allocation2 + $0xc0] sm:$0xff] %vm351_vm2, %v2188_v26 }
  0x34   : > { %1940 = vmatmul.msk.bf16.gmra.mxu0 %vm460_vm1, %v440_v22  ;;  %1944 = vmatmul.msk.bf16.gmra.mxu1 %vm460_vm1, %v444_v23  ;;  %378 = vst.msk [vmem:[#allocation2 + $0xc8] sm:$0xff] %vm351_vm2, %v2188_v26 }
  0x35   : > { %1948 = vmatmul.msk.bf16.gmra.mxu2 %vm460_vm1, %v448_v24  ;;  %380 = vst.msk [vmem:[#allocation2 + $0xd8] sm:$0xff] %vm351_vm2, %v2188_v26 }
  0x36   : > { %1952 = vmatmul.msk.bf16.gmra.mxu3 %vm460_vm1, %v452_v25  ;;  %381 = vst.msk [vmem:[#allocation2 + $0xe0] sm:$0xff] %vm351_vm2, %v2188_v26 }
  0x37   : > { %383 = vst.msk [vmem:[#allocation2 + $0xf0] sm:$0xff] %vm351_vm2, %v2188_v26 }
  0x38   : > { %384 = vst.msk [vmem:[#allocation2 + $0xf8] sm:$0xff] %vm351_vm2, %v2188_v26 }
  0x39   : > { %386 = vst.msk [vmem:[#allocation2 + $0x108] sm:$0xff] %vm351_vm2, %v2188_v26 }
  0x3a   : > { %387 = vst.msk [vmem:[#allocation2 + $0x110] sm:$0xff] %vm351_vm2, %v2188_v26 }
  0x3b   : > { %389 = vst.msk [vmem:[#allocation2 + $0x120] sm:$0xff] %vm351_vm2, %v2188_v26 }
  0x3c   : > { %390 = vst.msk [vmem:[#allocation2 + $0x128] sm:$0xff] %vm351_vm2, %v2188_v26 }
  0x3d   : > { %392 = vst.msk [vmem:[#allocation2 + $0x138] sm:$0xff] %vm351_vm2, %v2188_v26 }
  0x3e   : > { %393 = vst.msk [vmem:[#allocation2 + $0x140] sm:$0xff] %vm351_vm2, %v2188_v26 }
  0x3f   : > { %395 = vst.msk [vmem:[#allocation2 + $0x150] sm:$0xff] %vm351_vm2, %v2188_v26 }
  0x40   : > { %396 = vst.msk [vmem:[#allocation2 + $0x158] sm:$0xff] %vm351_vm2, %v2188_v26 }
  0x41   : > { %398 = vst.msk [vmem:[#allocation2 + $0x168] sm:$0xff] %vm351_vm2, %v2188_v26 }
  0x42   : > { %399 = vst.msk [vmem:[#allocation2 + $0x170] sm:$0xff] %vm351_vm2, %v2188_v26 }
  0x43   : > { %401 = vst.msk [vmem:[#allocation2 + $0x180] sm:$0xff] %vm351_vm2, %v2188_v26 }
  0x44   : > { %1941 = vmatmul.msk.bf16.gmra.mxu0 %vm460_vm1, %v441_v35  ;;  %1945 = vmatmul.msk.bf16.gmra.mxu1 %vm460_vm1, %v445_v36  ;;  %402 = vst.msk [vmem:[#allocation2 + $0x188] sm:$0xff] %vm351_vm2, %v2188_v26 }
  0x45   : > { %1949 = vmatmul.msk.bf16.gmra.mxu2 %vm460_vm1, %v449_v37  ;;  %355 = vst.msk [vmem:[#allocation2 + $0x10] sm:$0x3] %vm354_vm3, %v2188_v26 }
  0x46   : > { %1953 = vmatmul.msk.bf16.gmra.mxu3 %vm460_vm1, %v453_v38  ;;  %358 = vst.msk [vmem:[#allocation2 + $0x28] sm:$0x3] %vm354_vm3, %v2188_v26 }
  0x47   : > { %406 = vst.msk [vmem:[#allocation2 + $0x1a8] sm:$0x3] %vm354_vm3, %v2188_v26 }
  0x48   : > { %361 = vst.msk [vmem:[#allocation2 + $0x40] sm:$0x3] %vm354_vm3, %v2188_v26 }
  0x49   : > { %364 = vst.msk [vmem:[#allocation2 + $0x58] sm:$0x3] %vm354_vm3, %v2188_v26 }
  0x4a   : > { %367 = vst.msk [vmem:[#allocation2 + $0x70] sm:$0x3] %vm354_vm3, %v2188_v26 }
  0x4b   : > { %370 = vst.msk [vmem:[#allocation2 + $0x88] sm:$0x3] %vm354_vm3, %v2188_v26 }
  0x4c   : > { %373 = vst.msk [vmem:[#allocation2 + $0xa0] sm:$0x3] %vm354_vm3, %v2188_v26 }
  0x4d   : > { %376 = vst.msk [vmem:[#allocation2 + $0xb8] sm:$0x3] %vm354_vm3, %v2188_v26 }
  0x4e   : > { %379 = vst.msk [vmem:[#allocation2 + $0xd0] sm:$0x3] %vm354_vm3, %v2188_v26 }
  0x4f   : > { %382 = vst.msk [vmem:[#allocation2 + $0xe8] sm:$0x3] %vm354_vm3, %v2188_v26 }
  0x50   : > { %385 = vst.msk [vmem:[#allocation2 + $0x100] sm:$0x3] %vm354_vm3, %v2188_v26 }
  0x51   : > { %388 = vst.msk [vmem:[#allocation2 + $0x118] sm:$0x3] %vm354_vm3, %v2188_v26 }
  0x52   : > { %391 = vst.msk [vmem:[#allocation2 + $0x130] sm:$0x3] %vm354_vm3, %v2188_v26 }
  0x53   : > { %394 = vst.msk [vmem:[#allocation2 + $0x148] sm:$0x3] %vm354_vm3, %v2188_v26 }
  0x54   : > { %1942 = vmatmul.msk.bf16.gmra.mxu0 %vm460_vm1, %v442_v47  ;;  %1946 = vmatmul.msk.bf16.gmra.mxu1 %vm460_vm1, %v446_v48  ;;  %397 = vst.msk [vmem:[#allocation2 + $0x160] sm:$0x3] %vm354_vm3, %v2188_v26 }
  0x55   : > { %1950 = vmatmul.msk.bf16.gmra.mxu2 %vm460_vm1, %v450_v49  ;;  %400 = vst.msk [vmem:[#allocation2 + $0x178] sm:$0x3] %vm354_vm3, %v2188_v26 }
  0x56   : > { %1954 = vmatmul.msk.bf16.gmra.mxu3 %vm460_vm1, %v454_v50  ;;  %403 = vst.msk [vmem:[#allocation2 + $0x190] sm:$0x3] %vm354_vm3, %v2188_v26 }
  0xa1   : > { %v522_v52 = vpop.f32.mrf.mxu0  ;;  %v542_v53 = vpop.f32.mrf.mxu1 }
  0xa2   : > { %v523_v54 = vadd.f32 %v2481_v51, %v522_v52  ;;  %v543_v55 = vadd.f32 %v2481_v51, %v542_v53 }
  0xa4   : > { %v602_v56 = vmax.f32 %v523_v54, 0.0  ;;  %v610_v57 = vmax.f32 %v543_v55, 0.0 }
  0xa6   : > { %635 = vst.msk [vmem:[#allocation2 + $0x19] sm:$0xff] %vm351_vm2, %v602_v56 }
  0xa7   : > { %643 = vst.msk [vmem:[#allocation2 + $0x79] sm:$0xff] %vm351_vm2, %v610_v57 }
  0xa8   : > { %v562_v58 = vpop.f32.mrf.mxu2 }
  0xa9   : > { %v582_v59 = vpop.f32.mrf.mxu3  ;;  %v563_v60 = vadd.f32 %v2481_v51, %v562_v58  ;;  %v524_v62 = vpop.f32.mrf.mxu0 }
  0xaa   : > { %v583_v61 = vadd.f32 %v2481_v51, %v582_v59  ;;  %v544_v63 = vpop.f32.mrf.mxu1  ;;  %v525_v0 = vadd.f32 %v2481_v51, %v524_v62 }
  0xab   : > { %v545_v1 = vadd.f32 %v2481_v51, %v544_v63  ;;  %v618_v2 = vmax.f32 %v563_v60, 0.0 }
  0xac   : > { %v626_v3 = vmax.f32 %v583_v61, 0.0  ;;  %v603_v4 = vmax.f32 %v525_v0, 0.0 }
  0xad   : > { %v611_v5 = vmax.f32 %v545_v1, 0.0  ;;  %651 = vst.msk [vmem:[#allocation2 + $0xd9] sm:$0xff] %vm351_vm2, %v618_v2 }
  0xae   : > { %659 = vst.msk [vmem:[#allocation2 + $0x139] sm:$0xff] %vm351_vm2, %v626_v3 }
  0xaf   : > { %636 = vst.msk [vmem:[#allocation2 + $0x21] sm:$0xff] %vm351_vm2, %v603_v4 }
  0xb0   : > { %644 = vst.msk [vmem:[#allocation2 + $0x81] sm:$0xff] %vm351_vm2, %v611_v5  ;;  %v564_v6 = vpop.f32.mrf.mxu2 }
  0xb1   : > { %v584_v7 = vpop.f32.mrf.mxu3  ;;  %v565_v8 = vadd.f32 %v2481_v51, %v564_v6  ;;  %v527_v10 = vpop.f32.mrf.mxu0 }
  0xb2   : > { %v585_v9 = vadd.f32 %v2481_v51, %v584_v7  ;;  %v547_v11 = vpop.f32.mrf.mxu1  ;;  %v528_v12 = vadd.f32 %v2481_v51, %v527_v10 }
  0xb3   : > { %v548_v13 = vadd.f32 %v2481_v51, %v547_v11  ;;  %v619_v14 = vmax.f32 %v565_v8, 0.0 }
  0xb4   : > { %v627_v15 = vmax.f32 %v585_v9, 0.0  ;;  %v604_v16 = vmax.f32 %v528_v12, 0.0 }
  0xb5   : > { %v612_v17 = vmax.f32 %v548_v13, 0.0  ;;  %652 = vst.msk [vmem:[#allocation2 + $0xe1] sm:$0xff] %vm351_vm2, %v619_v14 }
  0xb6   : > { %660 = vst.msk [vmem:[#allocation2 + $0x141] sm:$0xff] %vm351_vm2, %v627_v15 }
  0xb7   : > { %637 = vst.msk [vmem:[#allocation2 + $0x31] sm:$0xff] %vm351_vm2, %v604_v16 }
  0xb8   : > { %645 = vst.msk [vmem:[#allocation2 + $0x91] sm:$0xff] %vm351_vm2, %v612_v17  ;;  %v567_v18 = vpop.f32.mrf.mxu2 }
  0xb9   : > { %v587_v19 = vpop.f32.mrf.mxu3  ;;  %v568_v20 = vadd.f32 %v2481_v51, %v567_v18  ;;  %v529_v22 = vpop.f32.mrf.mxu0 }
  0xba   : > { %v588_v21 = vadd.f32 %v2481_v51, %v587_v19  ;;  %v549_v23 = vpop.f32.mrf.mxu1  ;;  %v530_v24 = vadd.f32 %v2481_v51, %v529_v22 }
  0xbb   : > { %v550_v25 = vadd.f32 %v2481_v51, %v549_v23  ;;  %v620_v26 = vmax.f32 %v568_v20, 0.0 }
  0xbc   : > { %v628_v27 = vmax.f32 %v588_v21, 0.0  ;;  %v605_v28 = vmax.f32 %v530_v24, 0.0 }
  0xbd   : > { %v613_v29 = vmax.f32 %v550_v25, 0.0  ;;  %653 = vst.msk [vmem:[#allocation2 + $0xf1] sm:$0xff] %vm351_vm2, %v620_v26 }
  0xbe   : > { %661 = vst.msk [vmem:[#allocation2 + $0x151] sm:$0xff] %vm351_vm2, %v628_v27 }
  0xbf   : > { %638 = vst.msk [vmem:[#allocation2 + $0x39] sm:$0xff] %vm351_vm2, %v605_v28 }
  0xc0   : > { %646 = vst.msk [vmem:[#allocation2 + $0x99] sm:$0xff] %vm351_vm2, %v613_v29  ;;  %v569_v30 = vpop.f32.mrf.mxu2 }
  0xc1   : > { %v589_v31 = vpop.f32.mrf.mxu3  ;;  %v570_v32 = vadd.f32 %v2481_v51, %v569_v30  ;;  %v532_v34 = vpop.f32.mrf.mxu0 }
  0xc2   : > { %v590_v33 = vadd.f32 %v2481_v51, %v589_v31  ;;  %v552_v35 = vpop.f32.mrf.mxu1  ;;  %v533_v36 = vadd.f32 %v2481_v51, %v532_v34 }
  0xc3   : > { %v553_v37 = vadd.f32 %v2481_v51, %v552_v35  ;;  %v621_v38 = vmax.f32 %v570_v32, 0.0 }
  0xc4   : > { %v629_v39 = vmax.f32 %v590_v33, 0.0  ;;  %v606_v40 = vmax.f32 %v533_v36, 0.0 }
  0xc5   : > { %v614_v41 = vmax.f32 %v553_v37, 0.0  ;;  %654 = vst.msk [vmem:[#allocation2 + $0xf9] sm:$0xff] %vm351_vm2, %v621_v38 }
  0xc6   : > { %662 = vst.msk [vmem:[#allocation2 + $0x159] sm:$0xff] %vm351_vm2, %v629_v39 }
  0xc7   : > { %639 = vst.msk [vmem:[#allocation2 + $0x49] sm:$0xff] %vm351_vm2, %v606_v40 }
  0xc8   : > { %647 = vst.msk [vmem:[#allocation2 + $0xa9] sm:$0xff] %vm351_vm2, %v614_v41  ;;  %v572_v42 = vpop.f32.mrf.mxu2 }
  0xc9   : > { %v592_v43 = vpop.f32.mrf.mxu3  ;;  %v573_v44 = vadd.f32 %v2481_v51, %v572_v42  ;;  %v534_v46 = vpop.f32.mrf.mxu0 }
  0xca   : > { %v593_v45 = vadd.f32 %v2481_v51, %v592_v43  ;;  %v554_v47 = vpop.f32.mrf.mxu1  ;;  %v535_v48 = vadd.f32 %v2481_v51, %v534_v46 }
  0xcb   : > { %v555_v49 = vadd.f32 %v2481_v51, %v554_v47  ;;  %v622_v50 = vmax.f32 %v573_v44, 0.0 }
  0xcc   : > { %v630_v52 = vmax.f32 %v593_v45, 0.0  ;;  %v607_v53 = vmax.f32 %v535_v48, 0.0 }
  0xcd   : > { %v615_v54 = vmax.f32 %v555_v49, 0.0  ;;  %655 = vst.msk [vmem:[#allocation2 + $0x109] sm:$0xff] %vm351_vm2, %v622_v50 }
  0xce   : > { %663 = vst.msk [vmem:[#allocation2 + $0x169] sm:$0xff] %vm351_vm2, %v630_v52 }
  0xcf   : > { %640 = vst.msk [vmem:[#allocation2 + $0x51] sm:$0xff] %vm351_vm2, %v607_v53 }
  0xd0   : > { %648 = vst.msk [vmem:[#allocation2 + $0xb1] sm:$0xff] %vm351_vm2, %v615_v54  ;;  %v574_v55 = vpop.f32.mrf.mxu2 }
  0xd1   : > { %v594_v56 = vpop.f32.mrf.mxu3  ;;  %v575_v57 = vadd.f32 %v2481_v51, %v574_v55  ;;  %v537_v59 = vpop.f32.mrf.mxu0 }
  0xd2   : > { %v595_v58 = vadd.f32 %v2481_v51, %v594_v56  ;;  %v557_v60 = vpop.f32.mrf.mxu1  ;;  %v538_v61 = vadd.f32 %v2481_v51, %v537_v59 }
  0xd3   : > { %v558_v62 = vadd.f32 %v2481_v51, %v557_v60  ;;  %v623_v63 = vmax.f32 %v575_v57, 0.0 }
  0xd4   : > { %v631_v0 = vmax.f32 %v595_v58, 0.0  ;;  %v608_v1 = vmax.f32 %v538_v61, 0.0 }
  0xd5   : > { %v616_v2 = vmax.f32 %v558_v62, 0.0  ;;  %656 = vst.msk [vmem:[#allocation2 + $0x111] sm:$0xff] %vm351_vm2, %v623_v63 }
  0xd6   : > { %664 = vst.msk [vmem:[#allocation2 + $0x171] sm:$0xff] %vm351_vm2, %v631_v0 }
  0xd7   : > { %641 = vst.msk [vmem:[#allocation2 + $0x61] sm:$0xff] %vm351_vm2, %v608_v1 }
  0xd8   : > { %649 = vst.msk [vmem:[#allocation2 + $0xc1] sm:$0xff] %vm351_vm2, %v616_v2  ;;  %v577_v3 = vpop.f32.mrf.mxu2 }
  0xd9   : > { %v597_v4 = vpop.f32.mrf.mxu3  ;;  %v578_v5 = vadd.f32 %v2481_v51, %v577_v3  ;;  %v539_v7 = vpop.f32.mrf.mxu0 }
  0xda   : > { %v598_v6 = vadd.f32 %v2481_v51, %v597_v4  ;;  %v559_v8 = vpop.f32.mrf.mxu1  ;;  %v540_v9 = vadd.f32 %v2481_v51, %v539_v7 }
  0xdb   : > { %v560_v10 = vadd.f32 %v2481_v51, %v559_v8  ;;  %v624_v11 = vmax.f32 %v578_v5, 0.0 }
  0xdc   : > { %v632_v12 = vmax.f32 %v598_v6, 0.0  ;;  %v609_v13 = vmax.f32 %v540_v9, 0.0 }
  0xdd   : > { %v617_v14 = vmax.f32 %v560_v10, 0.0  ;;  %657 = vst.msk [vmem:[#allocation2 + $0x121] sm:$0xff] %vm351_vm2, %v624_v11 }
  0xde   : > { %665 = vst.msk [vmem:[#allocation2 + $0x181] sm:$0xff] %vm351_vm2, %v632_v12 }
  0xdf   : > { %642 = vst.msk [vmem:[#allocation2 + $0x69] sm:$0xff] %vm351_vm2, %v609_v13 }
  0xe0   : > { %650 = vst.msk [vmem:[#allocation2 + $0xc9] sm:$0xff] %vm351_vm2, %v617_v14  ;;  %v579_v15 = vpop.f32.mrf.mxu2 }
  0xe1   : > { %v599_v16 = vpop.f32.mrf.mxu3  ;;  %v580_v17 = vadd.f32 %v2481_v51, %v579_v15 }
  0xe2   : > { %v600_v18 = vadd.f32 %v2481_v51, %v599_v16 }
  0xe3   : > { %v625_v19 = vmax.f32 %v580_v17, 0.0 }
  0xe4   : > { %v633_v20 = vmax.f32 %v600_v18, 0.0 }
  0xe5   : > { %658 = vst.msk [vmem:[#allocation2 + $0x129] sm:$0xff] %vm351_vm2, %v625_v19 }
  0xe6   : > { %666 = vst.msk [vmem:[#allocation2 + $0x189] sm:$0xff] %vm351_vm2, %v633_v20 }
  0xe7 PF: > { %vm1621_vm4 = vcmask 1043456   ;;  %v1700_v21 = vld [vmem:[%s3393_s7] sm:$0xf]  ;;  %s1987_s17 = sshll.u32 %s2170_s12, 7  ;;  %v1582_v51 = vld [vmem:[%s3391_s5 + $0x8] sm:$0xf] }
  0xe8   : > { %v1727_v22 = vsel %vm1621_vm4, %v1700_v21, 0  ;;  %s2559_s18 = scalar_lea.vmem %s2320_s20, %s1987_s17  ;;  %s1956_s14 = smul.u32 192, %s2170_s12  ;;  %vm1701_vm5 = vcmask 64512   ;;  %v1592_v25 = vunpack.c.l.b16 %v1582_v51  ;;  %v2573_v29 = vld [vmem:[%s3389_s3] ss:$0 sm:$0xff]  ;;  %vm784_vm6 = vcmask 1046528  }
  0xe9   : > { %1736 = vmatpush.bf16.msra.mxu1 %v1727_v22  ;;  %v1676_v23 = vld [vmem:[%s2559_s18] sm:$0xff]  ;;  %v1677_v24 = vld [vmem:[%s2559_s18 + $0x8] sm:$0xff]  ;;  %1994 = vmatpush.bf16.msra.mxu3 %v1727_v22  ;;  %v2568_v27 = vld [vmem:[%s2559_s18 + $0x10] sm:$0xff]  ;;  %vm907_vm7 = vcmask 1045504   ;;  %vm1596_vm8 = vcmask 195584   ;;  %vm1814_vm9 = vcmask 130048  }
  0xea   : > { %v1692_v26 = vpack.c.bf16 %v1677_v24, %v1676_v23  ;;  %v1594_v28 = vpack.c.b16 %v1592_v25, %v1592_v25  ;;  %v2577_v30 = vld [vmem:[%s2559_s18 + $0x18] sm:$0xff]  ;;  %v1986_v31 = vld [vmem:[%s3391_s5] sm:$0xff]  ;;  %s2582_s17 = scalar_lea.vmem [#allocation2], %s1956_s14  ;;  %v2674_v21 = vld [vmem:[%s3389_s3 + $0x8] ss:$0 sm:$0xff]  ;;  %s1988_s20 = sshll.u32 %s2170_s12, 4 }
  0xeb   : > { %v2597_v38 = vld [vmem:[%s3389_s3 + $0x1] ss:$0 sm:$0xff]  ;;  %v2602_v39 = vld [vmem:[%s3389_s3 + $0x2] ss:$0 sm:$0xff]  ;;  %v1693_v40 = vpack.c.bf16 %v2577_v30, %v2568_v27  ;;  %v2611_v43 = vld [vmem:[%s3389_s3 + $0x3] ss:$0 sm:$0xff] }
  0xec   : > { %1970 = vmatmul.msk.bf16.vlgmr.msra.gmra.mxu1 %vm1701_vm5, %v1692_v26  ;;  %v1623_v34 = vsel %vm1621_vm4, %v1594_v28, 0  ;;  %v2620_v48 = vld [vmem:[%s3389_s3 + $0x4] ss:$0 sm:$0xff]  ;;  %v2625_v49 = vld [vmem:[%s3389_s3 + $0x5] ss:$0 sm:$0xff]  ;;  %s1981_s19 = sshll.u32 %s2174_s13, 5 }
  0xed   : > { %v670_v32 = vld [vmem:[%s2582_s17] sm:$0xff]  ;;  %v671_v33 = vld [vmem:[%s2582_s17 + $0x8] sm:$0xff]  ;;  %v672_v35 = vld [vmem:[%s2582_s17 + $0x10] sm:$0x3]  ;;  %1631 = vmatpush.bf16.msra.mxu0 %v1623_v34  ;;  %1992 = vmatpush.bf16.msra.mxu2 %v1623_v34  ;;  %s1844_s26 = sadd.s32 %s1988_s20, %s1981_s19  ;;  %s1847_s12 = sshll.u32 %s2322_s21, 4  ;;  %s1848_s12 = int_to_ptr.vmem [resolvable:$true] %s1847_s12 }
  0xee   : > { %v2589_v36 = vld [vmem:[%s2582_s17 + $0x18] sm:$0xff]  ;;  %v2592_v37 = vld [vmem:[%s2582_s17 + $0x20] sm:$0xff]  ;;  %v702_v41 = vmul.f32 %v2573_v29, %v670_v32  ;;  %v703_v42 = vmul.f32 %v2573_v29, %v671_v33  ;;  %v736_v44 = vmul.f32 %v2597_v38, %v670_v32  ;;  %v737_v45 = vmul.f32 %v2597_v38, %v671_v33  ;;  %v2628_v50 = vld [vmem:[%s2582_s17 + $0x28] sm:$0x3]  ;;  %s1832_s25 = scalar_lea.sflag [#allocation4], %s337_s28 }
  0xef   : > { %v738_v46 = vmul.f32 %v2597_v38, %v672_v35  ;;  %v859_v47 = vmul.f32 %v2602_v39, %v670_v32  ;;  %v860_v52 = vmul.f32 %v2602_v39, %v671_v33  ;;  %v861_v53 = vmul.f32 %v2602_v39, %v672_v35  ;;  %v2649_v4 = vld [vmem:[%s3389_s3 + $0x6] ss:$0 sm:$0xff]  ;;  %v2652_v5 = vld [vmem:[%s2582_s17 + $0x30] sm:$0xff]  ;;  %v2657_v10 = vld [vmem:[%s2582_s17 + $0x38] sm:$0xff] }
  0xf0   : > { %v982_v54 = vmul.f32 %v2611_v43, %v2589_v36  ;;  %v983_v55 = vmul.f32 %v2611_v43, %v2592_v37  ;;  %v785_v56 = vrot.slane %v736_v44, 1  ;;  %v786_v57 = vrot.slane %v737_v45, 1  ;;  %v2664_v15 = vld [vmem:[%s3389_s3 + $0x7] ss:$0 sm:$0xff]  ;;  %v2667_v16 = vld [vmem:[%s2582_s17 + $0x40] sm:$0x3] }
  0xf1   : > { %1632 = vmatpush.bf16.msra.mxu0 %v1986_v31  ;;  %1993 = vmatpush.bf16.msra.mxu2 %v1986_v31  ;;  %v788_v58 = vrot.slane %v738_v46, 1  ;;  %v908_v59 = vrot.slane %v859_v47, 2  ;;  %v909_v60 = vrot.slane %v860_v52, 2  ;;  %v911_v61 = vrot.slane %v861_v53, 2 }
  0xf2   : > { %v1016_v62 = vmul.f32 %v2620_v48, %v2589_v36  ;;  %v1017_v63 = vmul.f32 %v2620_v48, %v2592_v37  ;;  %v787_v0 = vsel %vm784_vm6, %v785_v56, %v786_v57  ;;  %v1018_v2 = vmul.f32 %v2620_v48, %v2628_v50 }
  0xf3   : > { %v789_v1 = vsel %vm784_vm6, %v786_v57, %v788_v58  ;;  %v1138_v3 = vmul.f32 %v2625_v49, %v2589_v36  ;;  %v841_v6 = vadd.f32 %v787_v0, %v702_v41  ;;  %v910_v8 = vsel %vm907_vm7, %v908_v59, %v909_v60  ;;  %v2701_v58 = vld [vmem:[%s2582_s17 + $0x60] sm:$0xff]  ;;  %v2704_v59 = vld [vmem:[%s2582_s17 + $0x68] sm:$0xff] }
  0xf4   : > { %v842_v7 = vadd.f32 %v789_v1, %v703_v42  ;;  %v912_v9 = vsel %vm907_vm7, %v909_v60, %v911_v61  ;;  %v1064_v11 = vrot.slane %v1016_v62, 1  ;;  %v1065_v12 = vrot.slane %v1017_v63, 1  ;;  %v2707_v60 = vld [vmem:[%s2582_s17 + $0x70] sm:$0x3] }
  0xf5   : > { %v1067_v13 = vrot.slane %v1018_v2, 1  ;;  %v1139_v14 = vmul.f32 %v2625_v49, %v2592_v37  ;;  %v964_v17 = vadd.f32 %v910_v8, %v841_v6  ;;  %v1140_v19 = vmul.f32 %v2625_v49, %v2628_v50 }
  0xf6   : > { %v965_v18 = vadd.f32 %v912_v9, %v842_v7  ;;  %v1186_v20 = vrot.slane %v1138_v3, 2  ;;  %v1066_v22 = vsel %vm784_vm6, %v1064_v11, %v1065_v12  ;;  %v1260_v24 = vmul.f32 %v2649_v4, %v2652_v5 }
  0xf7   : > { %v1068_v51 = vsel %vm784_vm6, %v1065_v12, %v1067_v13  ;;  %v1187_v23 = vrot.slane %v1139_v14, 2  ;;  %v998_v25 = vadd.f32 %v982_v54, %v964_v17  ;;  %v1189_v28 = vrot.slane %v1140_v19, 2  ;;  %v2726_v12 = vld [vmem:[%s3390_s4] ss:$0 sm:$0xff]  ;;  %v2729_v13 = vld [vmem:[%s2582_s17 + $0x78] sm:$0xff] }
  0xf8   : > { %v999_v26 = vadd.f32 %v983_v55, %v965_v18  ;;  %v1261_v31 = vmul.f32 %v2649_v4, %v2657_v10  ;;  %v1294_v33 = vmul.f32 %v2664_v15, %v2652_v5  ;;  %v1295_v34 = vmul.f32 %v2664_v15, %v2657_v10 }
  0xf9   : > { %v1188_v32 = vsel %vm907_vm7, %v1186_v20, %v1187_v23  ;;  %v1296_v35 = vmul.f32 %v2664_v15, %v2667_v16  ;;  %v1120_v41 = vadd.f32 %v1066_v22, %v998_v25  ;;  %v1190_v44 = vsel %vm907_vm7, %v1187_v23, %v1189_v28  ;;  %v2736_v23 = vld [vmem:[%s2582_s17 + $0x80] sm:$0xff] }
  0xfa   : > { %v1121_v42 = vadd.f32 %v1068_v51, %v999_v26  ;;  %v1416_v45 = vmul.f32 %v2674_v21, %v2652_v5  ;;  %v1342_v46 = vrot.slane %v1294_v33, 1  ;;  %v1343_v47 = vrot.slane %v1295_v34, 1 }
  0xfb   : > { %v1345_v52 = vrot.slane %v1296_v35, 1  ;;  %v1417_v53 = vmul.f32 %v2674_v21, %v2657_v10  ;;  %v1242_v54 = vadd.f32 %v1188_v32, %v1120_v41  ;;  %v1418_v56 = vmul.f32 %v2674_v21, %v2667_v16  ;;  %v2747_v35 = vld [vmem:[%s2582_s17 + $0x88] sm:$0x3] }
  0xfc   : > { %1971 = vmatmul.msk.bf16.gmra.mxu1 %vm1701_vm5, %v1693_v40  ;;  %v1243_v55 = vadd.f32 %v1190_v44, %v1121_v42  ;;  %v1464_v57 = vrot.slane %v1416_v45, 2  ;;  %v1344_v27 = vsel %vm784_vm6, %v1342_v46, %v1343_v47  ;;  %v710_v61 = vmul.f32 %v2573_v29, %v2701_v58 }
  0xfd   : > { %v1346_v30 = vsel %vm784_vm6, %v1343_v47, %v1345_v52  ;;  %v1465_v40 = vrot.slane %v1417_v53, 2  ;;  %v1276_v62 = vadd.f32 %v1260_v24, %v1242_v54  ;;  %v1467_v0 = vrot.slane %v1418_v56, 2  ;;  %v2757_v56 = vld [vmem:[%s2582_s17 + $0x90] sm:$0xff] }
  0xfe   : > { %v1277_v63 = vadd.f32 %v1261_v31, %v1243_v55  ;;  %v711_v1 = vmul.f32 %v2573_v29, %v2704_v59  ;;  %v748_v3 = vmul.f32 %v2597_v38, %v2701_v58  ;;  %v749_v6 = vmul.f32 %v2597_v38, %v2704_v59 }
  0xff   : > { %v1466_v2 = vsel %vm907_vm7, %v1464_v57, %v1465_v40  ;;  %v750_v7 = vmul.f32 %v2597_v38, %v2707_v60  ;;  %v1398_v8 = vadd.f32 %v1344_v27, %v1276_v62  ;;  %v1468_v11 = vsel %vm907_vm7, %v1465_v40, %v1467_v0  ;;  %v2760_v57 = vld [vmem:[%s2582_s17 + $0x98] sm:$0xff] }
 0x100   : > { %v1399_v9 = vadd.f32 %v1346_v30, %v1277_v63  ;;  %v871_v14 = vmul.f32 %v2602_v39, %v2701_v58  ;;  %v805_v17 = vrot.slane %v748_v3, 1  ;;  %v806_v18 = vrot.slane %v749_v6, 1 }
 0x101   : > { %v808_v19 = vrot.slane %v750_v7, 1  ;;  %v872_v20 = vmul.f32 %v2602_v39, %v2704_v59  ;;  %v1520_v22 = vadd.f32 %v1466_v2, %v1398_v8  ;;  %v873_v24 = vmul.f32 %v2602_v39, %v2707_v60  ;;  %v2768_v2 = vld [vmem:[%s2582_s17 + $0xa0] sm:$0x3] }
 0x102   : > { %v1521_v51 = vadd.f32 %v1468_v11, %v1399_v9  ;;  %v928_v25 = vrot.slane %v871_v14, 2  ;;  %v807_v26 = vsel %vm784_vm6, %v805_v17, %v806_v18  ;;  %v990_v32 = vmul.f32 %v2611_v43, %v2729_v13 }
 0x103   : > { %v809_v28 = vsel %vm784_vm6, %v806_v18, %v808_v19  ;;  %v929_v31 = vrot.slane %v872_v20, 2  ;;  %v1540_v33 = vadd.f32 %v2726_v12, %v1520_v22  ;;  %v849_v41 = vadd.f32 %v807_v26, %v710_v61 }
 0x104   : > { %v1541_v34 = vadd.f32 %v2726_v12, %v1521_v51  ;;  %v850_v42 = vadd.f32 %v809_v28, %v711_v1  ;;  %v931_v45 = vrot.slane %v873_v24, 2  ;;  %v991_v46 = vmul.f32 %v2611_v43, %v2736_v23 }
 0x105   : > { %v930_v44 = vsel %vm907_vm7, %v928_v25, %v929_v31  ;;  %v1028_v47 = vmul.f32 %v2620_v48, %v2729_v13  ;;  %v1556_v52 = vmax.f32 %v1540_v33, 0.0  ;;  %v1029_v55 = vmul.f32 %v2620_v48, %v2736_v23 }
 0x106   : > { %v1557_v53 = vmax.f32 %v1541_v34, 0.0  ;;  %v972_v54 = vadd.f32 %v930_v44, %v849_v41  ;;  %v932_v27 = vsel %vm907_vm7, %v929_v31, %v931_v45  ;;  %v1030_v30 = vmul.f32 %v2620_v48, %v2747_v35  ;;  %v1680_v34 = vld [vmem:[%s2559_s18 + $0x20] sm:$0xff]  ;;  %v1681_v41 = vld [vmem:[%s2559_s18 + $0x28] sm:$0xff] }
 0x107   : > { %v1084_v40 = vrot.slane %v1028_v47, 1  ;;  %v1150_v61 = vmul.f32 %v2625_v49, %v2729_v13  ;;  %v973_v63 = vadd.f32 %v932_v27, %v850_v42  ;;  %v1085_v1 = vrot.slane %v1029_v55, 1  ;;  %v1686_v47 = vld [vmem:[%s2559_s18 + $0x50] sm:$0xff] }
 0x108   : > { %v1572_v62 = vpack.c.bf16 %v1557_v53, %v1556_v52  ;;  %v1006_v0 = vadd.f32 %v990_v32, %v972_v54  ;;  %v1087_v3 = vrot.slane %v1030_v30, 1  ;;  %v1151_v6 = vmul.f32 %v2625_v49, %v2736_v23  ;;  %v1687_v52 = vld [vmem:[%s2559_s18 + $0x58] sm:$0xff] }
 0x109   : > { %v1152_v7 = vmul.f32 %v2625_v49, %v2747_v35  ;;  %v1206_v8 = vrot.slane %v1150_v61, 2  ;;  %v1007_v9 = vadd.f32 %v991_v46, %v973_v63  ;;  %v1086_v11 = vsel %vm784_vm6, %v1084_v40, %v1085_v1 }
 0x10a   : > { %1961 = vmatmul.msk.bf16.vlgmr.msra.gmra.mxu0 %vm1596_vm8, %v1572_v62  ;;  %v1268_v14 = vmul.f32 %v2649_v4, %v2757_v56  ;;  %v1269_v17 = vmul.f32 %v2649_v4, %v2760_v57  ;;  %v1088_v18 = vsel %vm784_vm6, %v1085_v1, %v1087_v3  ;;  %v1128_v19 = vadd.f32 %v1086_v11, %v1006_v0 }
 0x10b   : > { %v1207_v20 = vrot.slane %v1151_v6, 2  ;;  %v1209_v22 = vrot.slane %v1152_v7, 2  ;;  %v1129_v51 = vadd.f32 %v1088_v18, %v1007_v9  ;;  %v1306_v24 = vmul.f32 %v2664_v15, %v2757_v56 }
 0x10c   : > { %v1307_v25 = vmul.f32 %v2664_v15, %v2760_v57  ;;  %v1308_v26 = vmul.f32 %v2664_v15, %v2768_v2  ;;  %v1428_v32 = vmul.f32 %v2674_v21, %v2757_v56  ;;  %v1429_v33 = vmul.f32 %v2674_v21, %v2760_v57 }
 0x10d   : > { %v1208_v28 = vsel %vm907_vm7, %v1206_v8, %v1207_v20  ;;  %v1210_v31 = vsel %vm907_vm7, %v1207_v20, %v1209_v22  ;;  %v1362_v45 = vrot.slane %v1306_v24, 1  ;;  %v1430_v54 = vmul.f32 %v2674_v21, %v2768_v2 }
 0x10e   : > { %v1250_v42 = vadd.f32 %v1208_v28, %v1128_v19  ;;  %v1251_v44 = vadd.f32 %v1210_v31, %v1129_v51  ;;  %v1363_v46 = vrot.slane %v1307_v25, 1  ;;  %v1365_v53 = vrot.slane %v1308_v26, 1 }
 0x10f   : > { %v1484_v55 = vrot.slane %v1428_v32, 2  ;;  %v1485_v27 = vrot.slane %v1429_v33, 2  ;;  %v1694_v62 = vpack.c.bf16 %v1681_v41, %v1680_v34  ;;  %v1487_v1 = vrot.slane %v1430_v54, 2 }
 0x110   : > { %v1284_v30 = vadd.f32 %v1268_v14, %v1250_v42  ;;  %v1285_v40 = vadd.f32 %v1269_v17, %v1251_v44  ;;  %v1364_v61 = vsel %vm784_vm6, %v1362_v45, %v1363_v46  ;;  %v1366_v63 = vsel %vm784_vm6, %v1363_v46, %v1365_v53 }
 0x111   : > { %v1486_v0 = vsel %vm907_vm7, %v1484_v55, %v1485_v27  ;;  %v1697_v3 = vpack.c.bf16 %v1687_v52, %v1686_v47  ;;  %1972 = vmatmul.msk.bf16.gmra.mxu1 %vm1701_vm5, %v1694_v62  ;;  %v704_v8 = vmul.f32 %v2573_v29, %v2589_v36  ;;  %v705_v9 = vmul.f32 %v2573_v29, %v2592_v37  ;;  %v2839_v62 = vld [vmem:[%s2582_s17 + $0x50] sm:$0xff] }
 0x112   : > { %v1406_v6 = vadd.f32 %v1364_v61, %v1284_v30  ;;  %v1407_v7 = vadd.f32 %v1366_v63, %v1285_v40  ;;  %v1488_v11 = vsel %vm907_vm7, %v1485_v27, %v1487_v1  ;;  %v739_v14 = vmul.f32 %v2597_v38, %v2589_v36  ;;  %v2834_v27 = vld [vmem:[%s2582_s17 + $0x48] sm:$0xff] }
 0x113   : > { %1975 = vmatmul.msk.bf16.vlgmr.msra.gmra.mxu3 %vm1701_vm5, %v1697_v3  ;;  %v740_v17 = vmul.f32 %v2597_v38, %v2592_v37  ;;  %v741_v18 = vmul.f32 %v2597_v38, %v2628_v50  ;;  %v862_v22 = vmul.f32 %v2602_v39, %v2589_v36  ;;  %v863_v51 = vmul.f32 %v2602_v39, %v2592_v37 }
 0x114   : > { %v1528_v19 = vadd.f32 %v1486_v0, %v1406_v6  ;;  %v1529_v20 = vadd.f32 %v1488_v11, %v1407_v7  ;;  %v790_v24 = vrot.slane %v739_v14, 1  ;;  %v864_v28 = vmul.f32 %v2602_v39, %v2628_v50  ;;  %v2851_v11 = vld [vmem:[%s2582_s17 + $0x58] sm:$0x3] }
 0x115   : > { %v791_v25 = vrot.slane %v740_v17, 1  ;;  %v793_v26 = vrot.slane %v741_v18, 1  ;;  %v913_v33 = vrot.slane %v862_v22, 2  ;;  %v914_v34 = vrot.slane %v863_v51, 2 }
 0x116   : > { %v1548_v31 = vadd.f32 %v2726_v12, %v1528_v19  ;;  %v1549_v32 = vadd.f32 %v2726_v12, %v1529_v20  ;;  %v916_v42 = vrot.slane %v864_v28, 2  ;;  %v984_v37 = vmul.f32 %v2611_v43, %v2652_v5 }
 0x117   : > { %v792_v41 = vsel %vm784_vm6, %v790_v24, %v791_v25  ;;  %v794_v36 = vsel %vm784_vm6, %v791_v25, %v793_v26  ;;  %v915_v47 = vsel %vm907_vm7, %v913_v33, %v914_v34  ;;  %v985_v53 = vmul.f32 %v2611_v43, %v2657_v10 }
 0x118   : > { %v1564_v44 = vmax.f32 %v1548_v31, 0.0  ;;  %v1565_v45 = vmax.f32 %v1549_v32, 0.0  ;;  %v843_v46 = vadd.f32 %v792_v41, %v704_v8  ;;  %v844_v50 = vadd.f32 %v794_v36, %v705_v9 }
 0x119   : > { %v917_v52 = vsel %vm907_vm7, %v914_v34, %v916_v42  ;;  %v1019_v54 = vmul.f32 %v2620_v48, %v2652_v5  ;;  %v1020_v61 = vmul.f32 %v2620_v48, %v2657_v10  ;;  %v1021_v63 = vmul.f32 %v2620_v48, %v2667_v16 }
 0x11a   : > { %v1576_v55 = vpack.c.bf16 %v1565_v45, %v1564_v44  ;;  %v966_v30 = vadd.f32 %v915_v47, %v843_v46  ;;  %v967_v40 = vadd.f32 %v917_v52, %v844_v50  ;;  %v1141_v1 = vmul.f32 %v2625_v49, %v2652_v5 }
 0x11b   : > { %v1069_v0 = vrot.slane %v1019_v54, 1  ;;  %v1142_v3 = vmul.f32 %v2625_v49, %v2657_v10  ;;  %v1070_v8 = vrot.slane %v1020_v61, 1  ;;  %v1143_v9 = vmul.f32 %v2625_v49, %v2667_v16 }
 0x11c   : > { %1965 = vmatmul.msk.bf16.vlgmr.msra.gmra.mxu2 %vm1596_vm8, %v1576_v55  ;;  %v1000_v6 = vadd.f32 %v984_v37, %v966_v30  ;;  %v1001_v7 = vadd.f32 %v985_v53, %v967_v40  ;;  %v1072_v14 = vrot.slane %v1021_v63, 1  ;;  %v1191_v17 = vrot.slane %v1141_v1, 2 }
 0x11d   : > { %v1192_v18 = vrot.slane %v1142_v3, 2  ;;  %v1262_v19 = vmul.f32 %v2649_v4, %v2834_v27  ;;  %v1071_v20 = vsel %vm784_vm6, %v1069_v0, %v1070_v8  ;;  %v1194_v22 = vrot.slane %v1143_v9, 2 }
 0x11e   : > { %v1263_v51 = vmul.f32 %v2649_v4, %v2839_v62  ;;  %v1297_v24 = vmul.f32 %v2664_v15, %v2834_v27  ;;  %v1073_v25 = vsel %vm784_vm6, %v1070_v8, %v1072_v14  ;;  %v1122_v26 = vadd.f32 %v1071_v20, %v1000_v6 }
 0x11f   : > { %v1193_v28 = vsel %vm907_vm7, %v1191_v17, %v1192_v18  ;;  %v1298_v31 = vmul.f32 %v2664_v15, %v2839_v62  ;;  %v1123_v32 = vadd.f32 %v1073_v25, %v1001_v7  ;;  %v1195_v33 = vsel %vm907_vm7, %v1192_v18, %v1194_v22 }
 0x120   : > { %v1299_v34 = vmul.f32 %v2664_v15, %v2851_v11  ;;  %v1347_v41 = vrot.slane %v1297_v24, 1  ;;  %v1244_v36 = vadd.f32 %v1193_v28, %v1122_v26  ;;  %v1419_v37 = vmul.f32 %v2674_v21, %v2834_v27 }
 0x121   : > { %v1348_v42 = vrot.slane %v1298_v31, 1  ;;  %v1420_v44 = vmul.f32 %v2674_v21, %v2839_v62  ;;  %v1245_v45 = vadd.f32 %v1195_v33, %v1123_v32  ;;  %v1421_v50 = vmul.f32 %v2674_v21, %v2851_v11 }
 0x122   : > { %v1350_v46 = vrot.slane %v1299_v34, 1  ;;  %v712_v47 = vmul.f32 %v2573_v29, %v2729_v13  ;;  %v1278_v52 = vadd.f32 %v1262_v19, %v1244_v36  ;;  %v1469_v54 = vrot.slane %v1419_v37, 2 }
 0x123   : > { %v1349_v53 = vsel %vm784_vm6, %v1347_v41, %v1348_v42  ;;  %v1470_v55 = vrot.slane %v1420_v44, 2  ;;  %v1279_v30 = vadd.f32 %v1263_v51, %v1245_v45  ;;  %v1472_v61 = vrot.slane %v1421_v50, 2 }
 0x124   : > { %v1351_v40 = vsel %vm784_vm6, %v1348_v42, %v1350_v46  ;;  %v713_v63 = vmul.f32 %v2573_v29, %v2736_v23  ;;  %v1400_v0 = vadd.f32 %v1349_v53, %v1278_v52  ;;  %v751_v3 = vmul.f32 %v2597_v38, %v2729_v13 }
 0x125   : > { %v1471_v1 = vsel %vm907_vm7, %v1469_v54, %v1470_v55  ;;  %v752_v6 = vmul.f32 %v2597_v38, %v2736_v23  ;;  %v1401_v7 = vadd.f32 %v1351_v40, %v1279_v30  ;;  %v1473_v8 = vsel %vm907_vm7, %v1470_v55, %v1472_v61  ;;  %v2906_v54 = vld [vmem:[%s2582_s17 + $0xa8] sm:$0xff]  ;;  %v2909_v55 = vld [vmem:[%s2582_s17 + $0xb0] sm:$0xff] }
 0x126   : > { %v753_v9 = vmul.f32 %v2597_v38, %v2747_v35  ;;  %v874_v14 = vmul.f32 %v2602_v39, %v2729_v13  ;;  %v1522_v17 = vadd.f32 %v1471_v1, %v1400_v0  ;;  %v810_v18 = vrot.slane %v751_v3, 1 }
 0x127   : > { %v811_v19 = vrot.slane %v752_v6, 1  ;;  %v875_v20 = vmul.f32 %v2602_v39, %v2736_v23  ;;  %v1523_v22 = vadd.f32 %v1473_v8, %v1401_v7  ;;  %v876_v24 = vmul.f32 %v2602_v39, %v2747_v35 }
 0x128   : > { %v813_v51 = vrot.slane %v753_v9, 1  ;;  %v933_v25 = vrot.slane %v874_v14, 2  ;;  %v1542_v26 = vadd.f32 %v2726_v12, %v1522_v17  ;;  %v992_v32 = vmul.f32 %v2611_v43, %v2757_v56  ;;  %v2923_v14 = vld [vmem:[%s2582_s17 + $0xb8] sm:$0x3] }
 0x129   : > { %v812_v28 = vsel %vm784_vm6, %v810_v18, %v811_v19  ;;  %v934_v31 = vrot.slane %v875_v20, 2  ;;  %v1543_v33 = vadd.f32 %v2726_v12, %v1523_v22  ;;  %v936_v36 = vrot.slane %v876_v24, 2 }
 0x12a   : > { %v814_v34 = vsel %vm784_vm6, %v811_v19, %v813_v51  ;;  %v851_v41 = vadd.f32 %v812_v28, %v712_v47  ;;  %v1558_v42 = vmax.f32 %v1542_v26, 0.0  ;;  %v993_v45 = vmul.f32 %v2611_v43, %v2760_v57 }
 0x12b   : > { %v852_v37 = vadd.f32 %v814_v34, %v713_v63  ;;  %v935_v44 = vsel %vm907_vm7, %v933_v25, %v934_v31  ;;  %v1559_v46 = vmax.f32 %v1543_v33, 0.0  ;;  %v937_v50 = vsel %vm907_vm7, %v934_v31, %v936_v36  ;;  %v1682_v33 = vld [vmem:[%s2559_s18 + $0x30] sm:$0xff]  ;;  %v1683_v34 = vld [vmem:[%s2559_s18 + $0x38] sm:$0xff] }
 0x12c   : > { %v974_v52 = vadd.f32 %v935_v44, %v851_v41  ;;  %v1031_v53 = vmul.f32 %v2620_v48, %v2757_v56  ;;  %v1032_v30 = vmul.f32 %v2620_v48, %v2760_v57  ;;  %v1033_v40 = vmul.f32 %v2620_v48, %v2768_v2 }
 0x12d   : > { %v975_v47 = vadd.f32 %v937_v50, %v852_v37  ;;  %v1153_v61 = vmul.f32 %v2625_v49, %v2757_v56  ;;  %v1573_v63 = vpack.c.bf16 %v1559_v46, %v1558_v42  ;;  %v1154_v3 = vmul.f32 %v2625_v49, %v2760_v57 }
 0x12e   : > { %v1008_v0 = vadd.f32 %v992_v32, %v974_v52  ;;  %v1089_v1 = vrot.slane %v1031_v53, 1  ;;  %v1090_v7 = vrot.slane %v1032_v30, 1  ;;  %v1092_v8 = vrot.slane %v1033_v40, 1  ;;  %v1688_v52 = vld [vmem:[%s2559_s18 + $0x60] sm:$0xff]  ;;  %v1689_v53 = vld [vmem:[%s2559_s18 + $0x68] sm:$0xff] }
 0x12f   : > { %v1009_v6 = vadd.f32 %v993_v45, %v975_v47  ;;  %v1155_v9 = vmul.f32 %v2625_v49, %v2768_v2  ;;  %1962 = vmatmul.msk.bf16.gmra.mxu0 %vm1596_vm8, %v1573_v63  ;;  %v1211_v17 = vrot.slane %v1153_v61, 2  ;;  %v1212_v18 = vrot.slane %v1154_v3, 2 }
 0x130   : > { %v1270_v19 = vmul.f32 %v2649_v4, %v2906_v54  ;;  %v1271_v20 = vmul.f32 %v2649_v4, %v2909_v55  ;;  %v1091_v22 = vsel %vm784_vm6, %v1089_v1, %v1090_v7  ;;  %v1093_v51 = vsel %vm784_vm6, %v1090_v7, %v1092_v8 }
 0x131   : > { %v1214_v24 = vrot.slane %v1155_v9, 2  ;;  %v1309_v25 = vmul.f32 %v2664_v15, %v2906_v54  ;;  %v1130_v26 = vadd.f32 %v1091_v22, %v1008_v0  ;;  %v1131_v28 = vadd.f32 %v1093_v51, %v1009_v6 }
 0x132   : > { %v1213_v31 = vsel %vm907_vm7, %v1211_v17, %v1212_v18  ;;  %v1310_v32 = vmul.f32 %v2664_v15, %v2909_v55  ;;  %v1311_v36 = vmul.f32 %v2664_v15, %v2923_v14  ;;  %v1431_v37 = vmul.f32 %v2674_v21, %v2906_v54 }
 0x133   : > { %v1215_v41 = vsel %vm907_vm7, %v1212_v18, %v1214_v24  ;;  %v1367_v42 = vrot.slane %v1309_v25, 1  ;;  %v1252_v44 = vadd.f32 %v1213_v31, %v1130_v26  ;;  %v1432_v50 = vmul.f32 %v2674_v21, %v2909_v55 }
 0x134   : > { %v1253_v45 = vadd.f32 %v1215_v41, %v1131_v28  ;;  %v1368_v46 = vrot.slane %v1310_v32, 1  ;;  %v1370_v47 = vrot.slane %v1311_v36, 1  ;;  %v1433_v30 = vmul.f32 %v2674_v21, %v2923_v14 }
 0x135   : > { %v1489_v40 = vrot.slane %v1431_v37, 2  ;;  %v1695_v61 = vpack.c.bf16 %v1683_v34, %v1682_v33  ;;  %v1286_v63 = vadd.f32 %v1270_v19, %v1252_v44  ;;  %v1490_v3 = vrot.slane %v1432_v50, 2 }
 0x136   : > { %v1287_v0 = vadd.f32 %v1271_v20, %v1253_v45  ;;  %v1369_v1 = vsel %vm784_vm6, %v1367_v42, %v1368_v46  ;;  %v1371_v6 = vsel %vm784_vm6, %v1368_v46, %v1370_v47  ;;  %v1492_v7 = vrot.slane %v1433_v30, 2 }
 0x137   : > { %1973 = vmatmul.msk.bf16.gmra.mxu1 %vm1701_vm5, %v1695_v61  ;;  %v1698_v8 = vpack.c.bf16 %v1689_v53, %v1688_v52  ;;  %v706_v9 = vmul.f32 %v2573_v29, %v2652_v5  ;;  %v1408_v17 = vadd.f32 %v1369_v1, %v1286_v63  ;;  %v1491_v22 = vsel %vm907_vm7, %v1489_v40, %v1490_v3 }
 0x138   : > { %v1409_v18 = vadd.f32 %v1371_v6, %v1287_v0  ;;  %v707_v19 = vmul.f32 %v2573_v29, %v2657_v10  ;;  %v1493_v20 = vsel %vm907_vm7, %v1490_v3, %v1492_v7  ;;  %v742_v51 = vmul.f32 %v2597_v38, %v2652_v5 }
 0x139   : > { %1976 = vmatmul.msk.bf16.gmra.mxu3 %vm1701_vm5, %v1698_v8  ;;  %v743_v24 = vmul.f32 %v2597_v38, %v2657_v10  ;;  %v744_v25 = vmul.f32 %v2597_v38, %v2667_v16  ;;  %v1530_v26 = vadd.f32 %v1491_v22, %v1408_v17  ;;  %v865_v31 = vmul.f32 %v2602_v39, %v2652_v5 }
 0x13a   : > { %v1531_v28 = vadd.f32 %v1493_v20, %v1409_v18  ;;  %v866_v32 = vmul.f32 %v2602_v39, %v2657_v10  ;;  %v795_v33 = vrot.slane %v742_v51, 1  ;;  %v867_v36 = vmul.f32 %v2602_v39, %v2667_v16 }
 0x13b   : > { %v796_v34 = vrot.slane %v743_v24, 1  ;;  %v798_v41 = vrot.slane %v744_v25, 1  ;;  %v1550_v42 = vadd.f32 %v2726_v12, %v1530_v26  ;;  %v918_v44 = vrot.slane %v865_v31, 2 }
 0x13c   : > { %v1551_v37 = vadd.f32 %v2726_v12, %v1531_v28  ;;  %v919_v45 = vrot.slane %v866_v32, 2  ;;  %v921_v5 = vrot.slane %v867_v36, 2  ;;  %v986_v10 = vmul.f32 %v2611_v43, %v2834_v27 }
 0x13d   : > { %v797_v46 = vsel %vm784_vm6, %v795_v33, %v796_v34  ;;  %v799_v50 = vsel %vm784_vm6, %v796_v34, %v798_v41  ;;  %v1566_v52 = vmax.f32 %v1550_v42, 0.0  ;;  %v987_v61 = vmul.f32 %v2611_v43, %v2839_v62 }
 0x13e   : > { %v1567_v53 = vmax.f32 %v1551_v37, 0.0  ;;  %v845_v47 = vadd.f32 %v797_v46, %v706_v9  ;;  %v846_v30 = vadd.f32 %v799_v50, %v707_v19  ;;  %v920_v16 = vsel %vm907_vm7, %v918_v44, %v919_v45 }
 0x13f   : > { %v922_v40 = vsel %vm907_vm7, %v919_v45, %v921_v5  ;;  %v1022_v63 = vmul.f32 %v2620_v48, %v2834_v27  ;;  %v1023_v6 = vmul.f32 %v2620_v48, %v2839_v62  ;;  %v1024_v7 = vmul.f32 %v2620_v48, %v2851_v11 }
 0x140   : > { %v1577_v0 = vpack.c.bf16 %v1567_v53, %v1566_v52  ;;  %v968_v1 = vadd.f32 %v920_v16, %v845_v47  ;;  %v969_v3 = vadd.f32 %v922_v40, %v846_v30  ;;  %v1144_v9 = vmul.f32 %v2625_v49, %v2834_v27 }
 0x141   : > { %v1074_v8 = vrot.slane %v1022_v63, 1  ;;  %v1145_v17 = vmul.f32 %v2625_v49, %v2839_v62  ;;  %v1075_v19 = vrot.slane %v1023_v6, 1  ;;  %v1146_v20 = vmul.f32 %v2625_v49, %v2851_v11 }
 0x142   : > { %1966 = vmatmul.msk.bf16.gmra.mxu2 %vm1596_vm8, %v1577_v0  ;;  %v1002_v18 = vadd.f32 %v986_v10, %v968_v1  ;;  %v1003_v22 = vadd.f32 %v987_v61, %v969_v3  ;;  %v1077_v51 = vrot.slane %v1024_v7, 1  ;;  %v1196_v24 = vrot.slane %v1144_v9, 2 }
 0x143   : > { %v1197_v25 = vrot.slane %v1145_v17, 2  ;;  %v1264_v26 = vmul.f32 %v2649_v4, %v2701_v58  ;;  %v1076_v28 = vsel %vm784_vm6, %v1074_v8, %v1075_v19  ;;  %v1199_v31 = vrot.slane %v1146_v20, 2 }
 0x144   : > { %v1265_v32 = vmul.f32 %v2649_v4, %v2704_v59  ;;  %v1300_v33 = vmul.f32 %v2664_v15, %v2701_v58  ;;  %v1078_v34 = vsel %vm784_vm6, %v1075_v19, %v1077_v51  ;;  %v1124_v41 = vadd.f32 %v1076_v28, %v1002_v18 }
 0x145   : > { %v1198_v36 = vsel %vm907_vm7, %v1196_v24, %v1197_v25  ;;  %v1301_v42 = vmul.f32 %v2664_v15, %v2704_v59  ;;  %v1125_v37 = vadd.f32 %v1078_v34, %v1003_v22  ;;  %v1200_v44 = vsel %vm907_vm7, %v1197_v25, %v1199_v31 }
 0x146   : > { %v1302_v45 = vmul.f32 %v2664_v15, %v2707_v60  ;;  %v1352_v46 = vrot.slane %v1300_v33, 1  ;;  %v1246_v50 = vadd.f32 %v1198_v36, %v1124_v41  ;;  %v1422_v10 = vmul.f32 %v2674_v21, %v2701_v58 }
 0x147   : > { %v1353_v5 = vrot.slane %v1301_v42, 1  ;;  %v1423_v52 = vmul.f32 %v2674_v21, %v2704_v59  ;;  %v1247_v53 = vadd.f32 %v1200_v44, %v1125_v37  ;;  %v1424_v30 = vmul.f32 %v2674_v21, %v2707_v60 }
 0x148   : > { %v1355_v47 = vrot.slane %v1302_v45, 1  ;;  %v714_v16 = vmul.f32 %v2573_v29, %v2757_v56  ;;  %v1280_v40 = vadd.f32 %v1264_v26, %v1246_v50  ;;  %v1474_v63 = vrot.slane %v1422_v10, 2 }
 0x149   : > { %v1354_v61 = vsel %vm784_vm6, %v1352_v46, %v1353_v5  ;;  %v1475_v0 = vrot.slane %v1423_v52, 2  ;;  %v1281_v1 = vadd.f32 %v1265_v32, %v1247_v53  ;;  %v1477_v6 = vrot.slane %v1424_v30, 2  ;;  %v3047_v52 = vld [vmem:[%s2582_s17 + $0xc0] sm:$0xff]  ;;  %v3050_v53 = vld [vmem:[%s2582_s17 + $0xc8] sm:$0xff] }
 0x14a   : > { %v1356_v3 = vsel %vm784_vm6, %v1353_v5, %v1355_v47  ;;  %v715_v7 = vmul.f32 %v2573_v29, %v2760_v57  ;;  %v1402_v8 = vadd.f32 %v1354_v61, %v1280_v40  ;;  %v754_v17 = vmul.f32 %v2597_v38, %v2757_v56 }
 0x14b   : > { %v1476_v9 = vsel %vm907_vm7, %v1474_v63, %v1475_v0  ;;  %v755_v18 = vmul.f32 %v2597_v38, %v2760_v57  ;;  %v1403_v22 = vadd.f32 %v1356_v3, %v1281_v1  ;;  %v1478_v19 = vsel %vm907_vm7, %v1475_v0, %v1477_v6 }
 0x14c   : > { %v756_v20 = vmul.f32 %v2597_v38, %v2768_v2  ;;  %v877_v51 = vmul.f32 %v2602_v39, %v2757_v56  ;;  %v1524_v24 = vadd.f32 %v1476_v9, %v1402_v8  ;;  %v815_v29 = vrot.slane %v754_v17, 1 }
 0x14d   : > { %v816_v25 = vrot.slane %v755_v18, 1  ;;  %v878_v26 = vmul.f32 %v2602_v39, %v2760_v57  ;;  %v1525_v28 = vadd.f32 %v1478_v19, %v1403_v22  ;;  %v879_v32 = vmul.f32 %v2602_v39, %v2768_v2 }
 0x14e   : > { %v818_v31 = vrot.slane %v756_v20, 1  ;;  %v938_v33 = vrot.slane %v877_v51, 2  ;;  %v1544_v34 = vadd.f32 %v2726_v12, %v1524_v24  ;;  %v994_v56 = vmul.f32 %v2611_v43, %v2906_v54 }
 0x14f   : > { %v817_v38 = vsel %vm784_vm6, %v815_v29, %v816_v25  ;;  %v939_v41 = vrot.slane %v878_v26, 2  ;;  %v1545_v36 = vadd.f32 %v2726_v12, %v1525_v28  ;;  %v941_v37 = vrot.slane %v879_v32, 2  ;;  %v1684_v26 = vld [vmem:[%s2559_s18 + $0x40] sm:$0xff]  ;;  %v1685_v28 = vld [vmem:[%s2559_s18 + $0x48] sm:$0xff] }
 0x150   : > { %v819_v57 = vsel %vm784_vm6, %v816_v25, %v818_v31  ;;  %v853_v42 = vadd.f32 %v817_v38, %v714_v16  ;;  %v1560_v44 = vmax.f32 %v1544_v34, 0.0  ;;  %v995_v2 = vmul.f32 %v2611_v43, %v2909_v55 }
 0x151   : > { %v854_v45 = vadd.f32 %v819_v57, %v715_v7  ;;  %v940_v39 = vsel %vm907_vm7, %v938_v33, %v939_v41  ;;  %v1561_v46 = vmax.f32 %v1545_v36, 0.0  ;;  %v942_v50 = vsel %vm907_vm7, %v939_v41, %v941_v37  ;;  %v1690_v36 = vld [vmem:[%s2559_s18 + $0x70] sm:$0xff]  ;;  %v1691_v57 = vld [vmem:[%s2559_s18 + $0x78] sm:$0xff] }
 0x152   : > { %v976_v5 = vadd.f32 %v940_v39, %v853_v42  ;;  %v1034_v10 = vmul.f32 %v2620_v48, %v2906_v54  ;;  %v1035_v30 = vmul.f32 %v2620_v48, %v2909_v55  ;;  %v1036_v16 = vmul.f32 %v2620_v48, %v2923_v14  ;;  %v3064_v48 = vld [vmem:[%s2582_s17 + $0xd0] sm:$0x3] }
 0x153   : > { %v977_v47 = vadd.f32 %v942_v50, %v854_v45  ;;  %v1156_v43 = vmul.f32 %v2625_v49, %v2906_v54  ;;  %v1574_v40 = vpack.c.bf16 %v1561_v46, %v1560_v44  ;;  %v1157_v0 = vmul.f32 %v2625_v49, %v2909_v55 }
 0x154   : > { %v1010_v61 = vadd.f32 %v994_v56, %v976_v5  ;;  %v1094_v63 = vrot.slane %v1034_v10, 1  ;;  %v1095_v3 = vrot.slane %v1035_v30, 1  ;;  %v1097_v6 = vrot.slane %v1036_v16, 1 }
 0x155   : > { %v1011_v1 = vadd.f32 %v995_v2, %v977_v47  ;;  %v1158_v7 = vmul.f32 %v2625_v49, %v2923_v14  ;;  %1963 = vmatmul.msk.bf16.gmra.mxu0 %vm1596_vm8, %v1574_v40  ;;  %v1216_v8 = vrot.slane %v1156_v43, 2  ;;  %v1217_v9 = vrot.slane %v1157_v0, 2  ;;  %v3096_v47 = vld [vmem:[%s3389_s3] ss:$0 sm:$0xff] }
 0x156   : > { %v1272_v17 = vmul.f32 %v2649_v4, %v3047_v52  ;;  %v1273_v18 = vmul.f32 %v2649_v4, %v3050_v53  ;;  %v1096_v22 = vsel %vm784_vm6, %v1094_v63, %v1095_v3  ;;  %v1098_v19 = vsel %vm784_vm6, %v1095_v3, %v1097_v6  ;;  %v3108_v63 = vld [vmem:[%s3389_s3 + $0x1] ss:$0 sm:$0xff] }
 0x157   : > { %v1219_v20 = vrot.slane %v1158_v7, 2  ;;  %v1312_v49 = vmul.f32 %v2664_v15, %v3047_v52  ;;  %v1132_v51 = vadd.f32 %v1096_v22, %v1010_v61  ;;  %v1133_v24 = vadd.f32 %v1098_v19, %v1011_v1 }
 0x158   : > { %v1218_v29 = vsel %vm907_vm7, %v1216_v8, %v1217_v9  ;;  %v1313_v25 = vmul.f32 %v2664_v15, %v3050_v53  ;;  %v1314_v31 = vmul.f32 %v2664_v15, %v3064_v48  ;;  %v1434_v33 = vmul.f32 %v2674_v21, %v3047_v52  ;;  %v3119_v8 = vld [vmem:[%s3389_s3 + $0x2] ss:$0 sm:$0xff] }
 0x159   : > { %v1220_v4 = vsel %vm907_vm7, %v1217_v9, %v1219_v20  ;;  %v1372_v32 = vrot.slane %v1312_v49, 1  ;;  %v1254_v34 = vadd.f32 %v1218_v29, %v1132_v51  ;;  %v1435_v56 = vmul.f32 %v2674_v21, %v3050_v53 }
 0x15a   : > { %v1255_v38 = vadd.f32 %v1220_v4, %v1133_v24  ;;  %v1373_v41 = vrot.slane %v1313_v25, 1  ;;  %v1375_v42 = vrot.slane %v1314_v31, 1  ;;  %v1436_v37 = vmul.f32 %v2674_v21, %v3064_v48 }
 0x15b   : > { %v1494_v44 = vrot.slane %v1434_v33, 2  ;;  %v1696_v45 = vpack.c.bf16 %v1685_v28, %v1684_v26  ;;  %v1288_v39 = vadd.f32 %v1272_v17, %v1254_v34  ;;  %v1495_v46 = vrot.slane %v1435_v56, 2 }
 0x15c   : > { %v1289_v15 = vadd.f32 %v1273_v18, %v1255_v38  ;;  %v1374_v2 = vsel %vm784_vm6, %v1372_v32, %v1373_v41  ;;  %v1376_v50 = vsel %vm784_vm6, %v1373_v41, %v1375_v42  ;;  %v1497_v5 = vrot.slane %v1436_v37, 2  ;;  %v3145_v41 = vld [vmem:[%s3389_s3 + $0x4] ss:$0 sm:$0xff] }
 0x15d   : > { %1974 = vmatmul.msk.bf16.gmra.mxu1 %vm1701_vm5, %v1696_v45  ;;  %v1699_v10 = vpack.c.bf16 %v1691_v57, %v1690_v36  ;;  %v708_v21 = vmul.f32 %v3096_v47, %v2834_v27  ;;  %v1410_v30 = vadd.f32 %v1374_v2, %v1288_v39  ;;  %v1496_v43 = vsel %vm907_vm7, %v1494_v44, %v1495_v46  ;;  %v3156_v39 = vld [vmem:[%s3389_s3 + $0x5] ss:$0 sm:$0xff] }
 0x15e   : > { %v1411_v16 = vadd.f32 %v1376_v50, %v1289_v15  ;;  %v709_v40 = vmul.f32 %v3096_v47, %v2839_v62  ;;  %v1498_v61 = vsel %vm907_vm7, %v1495_v46, %v1497_v5  ;;  %v745_v0 = vmul.f32 %v3108_v63, %v2834_v27 }
 0x15f   : > { %1977 = vmatmul.msk.bf16.gmra.mxu3 %vm1701_vm5, %v1699_v10  ;;  %v746_v1 = vmul.f32 %v3108_v63, %v2839_v62  ;;  %v747_v3 = vmul.f32 %v3108_v63, %v2851_v11  ;;  %v1532_v6 = vadd.f32 %v1496_v43, %v1410_v30  ;;  %v868_v9 = vmul.f32 %v3119_v8, %v2834_v27  ;;  %v3168_v43 = vld [vmem:[%s3389_s3 + $0x6] ss:$0 sm:$0xff] }
 0x160   : > { %v1533_v7 = vadd.f32 %v1498_v61, %v1411_v16  ;;  %v869_v17 = vmul.f32 %v3119_v8, %v2839_v62  ;;  %v800_v18 = vrot.slane %v745_v0, 1  ;;  %v870_v20 = vmul.f32 %v3119_v8, %v2851_v11  ;;  %v3134_v62 = vld [vmem:[%s3389_s3 + $0x3] ss:$0 sm:$0xff] }
 0x161   : > { %v801_v22 = vrot.slane %v746_v1, 1  ;;  %v803_v19 = vrot.slane %v747_v3, 1  ;;  %v1552_v49 = vadd.f32 %v2726_v12, %v1532_v6  ;;  %v923_v24 = vrot.slane %v868_v9, 2 }
 0x162   : > { %v1553_v51 = vadd.f32 %v2726_v12, %v1533_v7  ;;  %v924_v29 = vrot.slane %v869_v17, 2  ;;  %v926_v27 = vrot.slane %v870_v20, 2  ;;  %v988_v28 = vmul.f32 %v3134_v62, %v2701_v58 }
 0x163   : > { %v802_v25 = vsel %vm784_vm6, %v800_v18, %v801_v22  ;;  %v804_v26 = vsel %vm784_vm6, %v801_v22, %v803_v19  ;;  %v1568_v11 = vmax.f32 %v1552_v49, 0.0  ;;  %v989_v38 = vmul.f32 %v3134_v62, %v2704_v59  ;;  %v3192_v49 = vld [vmem:[%s3389_s3 + $0x8] ss:$0 sm:$0xff] }
 0x164   : > { %v1569_v4 = vmax.f32 %v1553_v51, 0.0  ;;  %v847_v31 = vadd.f32 %v802_v25, %v708_v21  ;;  %v848_v32 = vadd.f32 %v804_v26, %v709_v40  ;;  %v925_v33 = vsel %vm907_vm7, %v923_v24, %v924_v29 }
 0x165   : > { %v927_v34 = vsel %vm907_vm7, %v924_v29, %v926_v27  ;;  %v1025_v56 = vmul.f32 %v3145_v41, %v2701_v58  ;;  %v1026_v37 = vmul.f32 %v3145_v41, %v2704_v59  ;;  %v1027_v44 = vmul.f32 %v3145_v41, %v2707_v60 }
 0x166   : > { %v1578_v36 = vpack.c.bf16 %v1569_v4, %v1568_v11  ;;  %v970_v57 = vadd.f32 %v925_v33, %v847_v31  ;;  %v971_v42 = vadd.f32 %v927_v34, %v848_v32  ;;  %v1147_v15 = vmul.f32 %v3156_v39, %v2701_v58 }
 0x167   : > { %v1079_v45 = vrot.slane %v1025_v56, 1  ;;  %v1148_v2 = vmul.f32 %v3156_v39, %v2704_v59  ;;  %v1080_v5 = vrot.slane %v1026_v37, 1  ;;  %v1149_v10 = vmul.f32 %v3156_v39, %v2707_v60  ;;  %v3178_v60 = vld [vmem:[%s3389_s3 + $0x7] ss:$0 sm:$0xff] }
 0x168   : > { %1967 = vmatmul.msk.bf16.gmra.mxu2 %vm1596_vm8, %v1578_v36  ;;  %v1004_v46 = vadd.f32 %v988_v28, %v970_v57  ;;  %v1005_v50 = vadd.f32 %v989_v38, %v971_v42  ;;  %v1082_v21 = vrot.slane %v1027_v44, 1  ;;  %v1201_v30 = vrot.slane %v1147_v15, 2 }
 0x169   : > { %v1202_v16 = vrot.slane %v1148_v2, 2  ;;  %v1266_v58 = vmul.f32 %v3168_v43, %v2729_v13  ;;  %v1081_v59 = vsel %vm784_vm6, %v1079_v45, %v1080_v5  ;;  %v1204_v40 = vrot.slane %v1149_v10, 2 }
 0x16a   : > { %v1267_v61 = vmul.f32 %v3168_v43, %v2736_v23  ;;  %v1303_v0 = vmul.f32 %v3178_v60, %v2729_v13  ;;  %v1083_v1 = vsel %vm784_vm6, %v1080_v5, %v1082_v21  ;;  %v1126_v3 = vadd.f32 %v1081_v59, %v1004_v46 }
 0x16b   : > { %v1203_v6 = vsel %vm907_vm7, %v1201_v30, %v1202_v16  ;;  %v1304_v7 = vmul.f32 %v3178_v60, %v2736_v23  ;;  %v1127_v9 = vadd.f32 %v1083_v1, %v1005_v50  ;;  %v1205_v17 = vsel %vm907_vm7, %v1202_v16, %v1204_v40 }
 0x16c   : > { %v1305_v18 = vmul.f32 %v3178_v60, %v2747_v35  ;;  %v1357_v22 = vrot.slane %v1303_v0, 1  ;;  %v1248_v19 = vadd.f32 %v1203_v6, %v1126_v3  ;;  %v1425_v51 = vmul.f32 %v3192_v49, %v2729_v13  ;;  %v698_v6 = vld [vmem:[%s2582_s17 + $0xe0] sm:$0xff] }
 0x16d   : > { %v1358_v20 = vrot.slane %v1304_v7, 1  ;;  %v1426_v24 = vmul.f32 %v3192_v49, %v2736_v23  ;;  %v1249_v29 = vadd.f32 %v1205_v17, %v1127_v9  ;;  %v1427_v26 = vmul.f32 %v3192_v49, %v2747_v35 }
 0x16e   : > { %v1360_v25 = vrot.slane %v1305_v18, 1  ;;  %v716_v27 = vmul.f32 %v3096_v47, %v2906_v54  ;;  %v1282_v28 = vadd.f32 %v1266_v58, %v1248_v19  ;;  %v1479_v4 = vrot.slane %v1425_v51, 2 }
 0x16f   : > { %v1359_v11 = vsel %vm784_vm6, %v1357_v22, %v1358_v20  ;;  %v1480_v31 = vrot.slane %v1426_v24, 2  ;;  %v1283_v32 = vadd.f32 %v1267_v61, %v1249_v29  ;;  %v1482_v13 = vrot.slane %v1427_v26, 2  ;;  %v699_v26 = vld [vmem:[%s2582_s17 + $0xe8] sm:$0x3] }
 0x170   : > { %v1361_v33 = vsel %vm784_vm6, %v1358_v20, %v1360_v25  ;;  %v717_v23 = vmul.f32 %v3096_v47, %v2909_v55  ;;  %v1404_v34 = vadd.f32 %v1359_v11, %v1282_v28  ;;  %v757_v35 = vmul.f32 %v3108_v63, %v2906_v54 }
 0x171   : > { %v1481_v38 = vsel %vm907_vm7, %v1479_v4, %v1480_v31  ;;  %v758_v56 = vmul.f32 %v3108_v63, %v2909_v55  ;;  %v1405_v36 = vadd.f32 %v1361_v33, %v1283_v32  ;;  %v1483_v57 = vsel %vm907_vm7, %v1480_v31, %v1482_v13 }
 0x172   : > { %v759_v42 = vmul.f32 %v3108_v63, %v2923_v14  ;;  %v880_v37 = vmul.f32 %v3119_v8, %v2906_v54  ;;  %v1526_v44 = vadd.f32 %v1481_v38, %v1404_v34  ;;  %v820_v47 = vrot.slane %v757_v35, 1 }
 0x173   : > { %v821_v45 = vrot.slane %v758_v56, 1  ;;  %v881_v15 = vmul.f32 %v3119_v8, %v2909_v55  ;;  %v1527_v2 = vadd.f32 %v1483_v57, %v1405_v36  ;;  %v882_v50 = vmul.f32 %v3119_v8, %v2923_v14 }
 0x174   : > { %v823_v46 = vrot.slane %v759_v42, 1  ;;  %v943_v5 = vrot.slane %v880_v37, 2  ;;  %v1546_v10 = vadd.f32 %v2726_v12, %v1526_v44  ;;  %v996_v54 = vmul.f32 %v3134_v62, %v3047_v52 }
 0x175   : > { %v822_v63 = vsel %vm784_vm6, %v820_v47, %v821_v45  ;;  %v944_v21 = vrot.slane %v881_v15, 2  ;;  %v1547_v30 = vadd.f32 %v2726_v12, %v1527_v2  ;;  %v946_v58 = vrot.slane %v882_v50, 2  ;;  %v697_v12 = vld [vmem:[%s2582_s17 + $0xd8] sm:$0xff]  ;;  %s1982_s17 = sshll.u32 %s1844_s26, 3 }
 0x176   : > { %v824_v55 = vsel %vm784_vm6, %v821_v45, %v823_v46  ;;  %v855_v16 = vadd.f32 %v822_v63, %v716_v27  ;;  %v1562_v59 = vmax.f32 %v1546_v10, 0.0  ;;  %v997_v8 = vmul.f32 %v3134_v62, %v3050_v53  ;;  %v3264_v10 = vld [vmem:[%s3392_s6] ss:$0 sm:$0xff]  ;;  %s1846_s24 = scalar_lea.hbm %s3395_s9, %s1982_s17  ;;  %s2112_s17 = scalar_lea.hbm %s3395_s9, 512 }
 0x177   : > { %v856_v40 = vadd.f32 %v824_v55, %v717_v23  ;;  %v945_v14 = vsel %vm907_vm7, %v943_v5, %v944_v21  ;;  %v1563_v61 = vmax.f32 %v1547_v30, 0.0  ;;  %v947_v0 = vsel %vm907_vm7, %v944_v21, %v946_v58  ;;  %v2091_v55 = vld [vmem:[%s3390_s4] ss:$0 sm:$0xff]  ;;  %s1849_s13 = sshll.u32 %s1846_s24, 4  ;;  %s1850_s13 = int_to_ptr.hbm [resolvable:$true] %s1849_s13 }
 0x178   : > { %v978_v1 = vadd.f32 %v945_v14, %v855_v16  ;;  %v1037_v3 = vmul.f32 %v3145_v41, %v3047_v52  ;;  %v1038_v9 = vmul.f32 %v3145_v41, %v3050_v53  ;;  %v1039_v17 = vmul.f32 %v3145_v41, %v3064_v48  ;;  %s2106_s14 = sshra.s32 %s1850_s13, 4  ;;  %s2107_s14 = int_to_ptr.hbm [resolvable:$true] %s2106_s14 }
 0x179   : > { %v979_v7 = vadd.f32 %v947_v0, %v856_v40  ;;  %v1159_v62 = vmul.f32 %v3156_v39, %v3047_v52  ;;  %v1575_v18 = vpack.c.bf16 %v1563_v61, %v1562_v59  ;;  %v1160_v20 = vmul.f32 %v3156_v39, %v3050_v53  ;;  %v3274_v40 = vld [vmem:[%s3394_s8] ss:$0 sm:$0xff]  ;;  %s2108_s20 = scalar_lea.hbm %s2107_s14, 128  ;;  %p2113_p4 = scmp.lt.s32.totalorder %s2107_s14, %s3395_s9 }
 0x17a   : > { %v1012_v22 = vadd.f32 %v996_v54, %v978_v1  ;;  %v1099_v19 = vrot.slane %v1037_v3, 1  ;;  %v1100_v24 = vrot.slane %v1038_v9, 1  ;;  %v1102_v29 = vrot.slane %v1039_v17, 1  ;;  %v1738_v54 = vpop.f32.mrf.mxu1  ;;  %p2109_p0 = scmp.ne.s32.totalorder %s2107_s14, %s2108_s20  ;;  %p2114_p5 = scmp.lt.s32.totalorder %s2112_s17, %s2108_s20 }
 0x17b   : > { %v1013_v51 = vadd.f32 %v997_v8, %v979_v7  ;;  %v1161_v25 = vmul.f32 %v3156_v39, %v3064_v48  ;;  %1964 = vmatmul.msk.bf16.gmra.mxu0 %vm1596_vm8, %v1575_v18  ;;  %v1221_v27 = vrot.slane %v1159_v62, 2  ;;  %v1222_v41 = vrot.slane %v1160_v20, 2 }
 0x17c   : > { %v1274_v28 = vmul.f32 %v3168_v43, %v697_v12  ;;  %v1275_v52 = vmul.f32 %v3168_v43, %v698_v6  ;;  %v1101_v11 = vsel %vm784_vm6, %v1099_v19, %v1100_v24  ;;  %v1103_v4 = vsel %vm784_vm6, %v1100_v24, %v1102_v29  ;;  %p2110_p1 = pnand %p2109_p0, %p2292_p3  ;;  %p2115_p6 = por %p2114_p5, %p2113_p4 }
 0x17d   : > { %v1224_v53 = vrot.slane %v1161_v25, 2  ;;  %v1315_v31 = vmul.f32 %v3178_v60, %v697_v12  ;;  %v1134_v32 = vadd.f32 %v1101_v11, %v1012_v22  ;;  %v1135_v33 = vadd.f32 %v1103_v4, %v1013_v51 }
 0x17e   : > { %v1223_v48 = vsel %vm907_vm7, %v1221_v27, %v1222_v41  ;;  %v1316_v39 = vmul.f32 %v3178_v60, %v698_v6  ;;  %v1317_v23 = vmul.f32 %v3178_v60, %v699_v26  ;;  %v1437_v43 = vmul.f32 %v3192_v49, %v697_v12  ;;  %p2111_p2 = pneg %p2110_p1 }
 0x17f   : > { %v1225_v13 = vsel %vm907_vm7, %v1222_v41, %v1224_v53  ;;  %v1377_v34 = vrot.slane %v1315_v31, 1  ;;  %v1256_v38 = vadd.f32 %v1223_v48, %v1134_v32  ;;  %v1438_v36 = vmul.f32 %v3192_v49, %v698_v6 }
 0x180   : > { %v1257_v35 = vadd.f32 %v1225_v13, %v1135_v33  ;;  %v1378_v56 = vrot.slane %v1316_v39, 1  ;;  %v1380_v57 = vrot.slane %v1317_v23, 1  ;;  %v1439_v42 = vmul.f32 %v3192_v49, %v699_v26  ;;  %p2116_p7 = pnand %p2115_p6, %p2111_p2 }
 0x181   : > { %v1499_v37 = vrot.slane %v1437_v43, 2  ;;  %v1290_v44 = vadd.f32 %v1274_v28, %v1256_v38  ;;  %v1500_v15 = vrot.slane %v1438_v36, 2 }
 0x182   : > { %v1291_v47 = vadd.f32 %v1275_v52, %v1257_v35  ;;  %v1379_v45 = vsel %vm784_vm6, %v1377_v34, %v1378_v56  ;;  %v1381_v2 = vsel %vm784_vm6, %v1378_v56, %v1380_v57  ;;  %v1502_v60 = vrot.slane %v1439_v42, 2  ;;  %v1740_v6 = vpop.f32.mrf.mxu1 }
 0x183   : > { %v1412_v46 = vadd.f32 %v1379_v45, %v1290_v44  ;;  %v1501_v5 = vsel %vm907_vm7, %v1499_v37, %v1500_v15 }
 0x184   : > { %v1413_v50 = vadd.f32 %v1381_v2, %v1291_v47  ;;  %v1503_v49 = vsel %vm907_vm7, %v1500_v15, %v1502_v60 }
 0x185   : > { %v1534_v63 = vadd.f32 %v1501_v5, %v1412_v46 }
 0x186   : > { %v1535_v21 = vadd.f32 %v1503_v49, %v1413_v50 }
 0x187   : > { %v1634_v30 = vpop.f32.mrf.mxu0  ;;  %v1554_v16 = vadd.f32 %v2091_v55, %v1534_v63 }
 0x188   : > { %v1555_v58 = vadd.f32 %v2091_v55, %v1535_v21  ;;  %v1635_v59 = vadd.f32 %v3264_v10, %v1634_v30 }
 0x189   : > { %v1570_v14 = vmax.f32 %v1554_v16, 0.0 }
 0x18a   : > { %v1571_v8 = vmax.f32 %v1555_v58, 0.0  ;;  %v1778_v61 = vadd.f32 %v1738_v54, %v1635_v59  ;;  %v1743_v17 = vpop.f32.mrf.mxu1 }
 0x18c   : > { %v1579_v0 = vpack.c.bf16 %v1571_v8, %v1570_v14  ;;  %v1798_v1 = vadd.f32 %v3274_v40, %v1778_v61 }
 0x18e   : > { %1968 = vmatmul.msk.bf16.gmra.mxu2 %vm1596_vm8, %v1579_v0  ;;  %1815 = vst.msk [vmem:[%s2322_s21] sm:$0xff] %vm1814_vm9, %v1798_v1 }
 0x18f   : > { %v1636_v3 = vpop.f32.mrf.mxu0 }
 0x190   : > { %v1637_v12 = vadd.f32 %v3264_v10, %v1636_v3 }
 0x192   : > { %v1779_v7 = vadd.f32 %v1740_v6, %v1637_v12  ;;  %v1745_v62 = vpop.f32.mrf.mxu1 }
 0x194   : > { %v1799_v9 = vadd.f32 %v3274_v40, %v1779_v7 }
 0x196   : > { %1816 = vst.msk [vmem:[%s2322_s21 + $0x8] sm:$0xff] %vm1814_vm9, %v1799_v9  ;;  %v1763_v52 = vpop.f32.mrf.mxu3 }
 0x19a   : > { %v1748_v51 = vpop.f32.mrf.mxu1 }
 0x19e   : > { %v1765_v39 = vpop.f32.mrf.mxu3 }
 0x19f   : > { %v1654_v20 = vpop.f32.mrf.mxu2 }
 0x1a0   : > { %v1655_v36 = vadd.f32 %v3264_v10, %v1654_v20 }
 0x1a2   : > { %v1750_v28 = vpop.f32.mrf.mxu1 }
 0x1a7   : > { %v1656_v41 = vpop.f32.mrf.mxu2 }
 0x1a8   : > { %v1657_v2 = vadd.f32 %v3264_v10, %v1656_v41 }
 0x1ac   : > { %v1639_v18 = vpop.f32.mrf.mxu0 }
 0x1ad   : > { %v1640_v22 = vadd.f32 %v3264_v10, %v1639_v18 }
 0x1af   : > { %v1780_v19 = vadd.f32 %v1743_v17, %v1640_v22 }
 0x1b1   : > { %v1800_v24 = vadd.f32 %v3274_v40, %v1780_v19 }
 0x1b3   : > { %1817 = vst.msk [vmem:[%s2322_s21 + $0x10] sm:$0xff] %vm1814_vm9, %v1800_v24 }
 0x1b4   : > { %v1641_v29 = vpop.f32.mrf.mxu0  ;;  %v1753_v53 = vpop.f32.mrf.mxu1 }
 0x1b5   : > { %v1642_v25 = vadd.f32 %v3264_v10, %v1641_v29 }
 0x1b7   : > { %v1781_v26 = vadd.f32 %v1745_v62, %v1642_v25 }
 0x1b9   : > { %v1801_v27 = vadd.f32 %v3274_v40, %v1781_v26 }
 0x1bb   : > { %1818 = vst.msk [vmem:[%s2322_s21 + $0x18] sm:$0xff] %vm1814_vm9, %v1801_v27 }
 0x1bc   : > { %v1755_v23 = vpop.f32.mrf.mxu1  ;;  %v1768_v5 = vpop.f32.mrf.mxu3 }
 0x1c4   : > { %v1770_v16 = vpop.f32.mrf.mxu3 }
 0x1c5   : > { %v1659_v11 = vpop.f32.mrf.mxu2 }
 0x1c6   : > { %v1660_v4 = vadd.f32 %v3264_v10, %v1659_v11 }
 0x1c8   : > { %v1788_v31 = vadd.f32 %v1763_v52, %v1660_v4 }
 0x1ca   : > { %v1808_v32 = vadd.f32 %v3274_v40, %v1788_v31 }
 0x1cc   : > { %1825 = vst.msk [vmem:[%s2322_s21 + $0x50] sm:$0xff] %vm1814_vm9, %v1808_v32 }
 0x1cd   : > { %v1661_v33 = vpop.f32.mrf.mxu2 }
 0x1ce   : > { %v1662_v48 = vadd.f32 %v3264_v10, %v1661_v33 }
 0x1d0   : > { %v1789_v13 = vadd.f32 %v1765_v39, %v1662_v48 }
 0x1d2   : > { %v1809_v34 = vadd.f32 %v3274_v40, %v1789_v13  ;;  %v1644_v43 = vpop.f32.mrf.mxu0 }
 0x1d3   : > { %v1645_v38 = vadd.f32 %v3264_v10, %v1644_v43 }
 0x1d4   : > { %1826 = vst.msk [vmem:[%s2322_s21 + $0x58] sm:$0xff] %vm1814_vm9, %v1809_v34 }
 0x1d5   : > { %v1782_v35 = vadd.f32 %v1748_v51, %v1645_v38 }
 0x1d7   : > { %v1802_v56 = vadd.f32 %v3274_v40, %v1782_v35 }
 0x1d9   : > { %1819 = vst.msk [vmem:[%s2322_s21 + $0x20] sm:$0xff] %vm1814_vm9, %v1802_v56 }
 0x1da   : > { %v1758_v57 = vpop.f32.mrf.mxu1  ;;  %v1646_v37 = vpop.f32.mrf.mxu0 }
 0x1db   : > { %v1786_v42 = vadd.f32 %v1758_v57, %v1655_v36  ;;  %v1647_v44 = vadd.f32 %v3264_v10, %v1646_v37 }
 0x1dd   : > { %v1806_v47 = vadd.f32 %v3274_v40, %v1786_v42  ;;  %v1783_v45 = vadd.f32 %v1750_v28, %v1647_v44 }
 0x1df   : > { %1823 = vst.msk [vmem:[%s2322_s21 + $0x40] sm:$0xff] %vm1814_vm9, %v1806_v47  ;;  %v1803_v15 = vadd.f32 %v3274_v40, %v1783_v45 }
 0x1e1   : > { %1820 = vst.msk [vmem:[%s2322_s21 + $0x28] sm:$0xff] %vm1814_vm9, %v1803_v15 }
 0x1e2   : > { %v1760_v60 = vpop.f32.mrf.mxu1  ;;  %v1773_v7 = vpop.f32.mrf.mxu3 }
 0x1e3   : > { %v1787_v46 = vadd.f32 %v1760_v60, %v1657_v2 }
 0x1e5   : > { %v1807_v50 = vadd.f32 %v3274_v40, %v1787_v46 }
 0x1e7   : > { %1824 = vst.msk [vmem:[%s2322_s21 + $0x48] sm:$0xff] %vm1814_vm9, %v1807_v50 }
 0x1ea   : > { %v1775_v20 = vpop.f32.mrf.mxu3 }
 0x1eb   : > { %v1664_v49 = vpop.f32.mrf.mxu2 }
 0x1ec   : > { %v1665_v63 = vadd.f32 %v3264_v10, %v1664_v49 }
 0x1ee   : > { %v1790_v21 = vadd.f32 %v1768_v5, %v1665_v63 }
 0x1f0   : > { %v1810_v54 = vadd.f32 %v3274_v40, %v1790_v21 }
 0x1f2   : > { %1827 = vst.msk [vmem:[%s2322_s21 + $0x60] sm:$0xff] %vm1814_vm9, %v1810_v54 }
 0x1f3   : > { %v1666_v30 = vpop.f32.mrf.mxu2 }
 0x1f4   : > { %v1667_v55 = vadd.f32 %v3264_v10, %v1666_v30 }
 0x1f6   : > { %v1791_v58 = vadd.f32 %v1770_v16, %v1667_v55 }
 0x1f8   : > { %v1811_v59 = vadd.f32 %v3274_v40, %v1791_v58  ;;  %v1649_v14 = vpop.f32.mrf.mxu0 }
 0x1f9   : > { %v1650_v8 = vadd.f32 %v3264_v10, %v1649_v14 }
 0x1fa   : > { %1828 = vst.msk [vmem:[%s2322_s21 + $0x68] sm:$0xff] %vm1814_vm9, %v1811_v59 }
 0x1fb   : > { %v1784_v61 = vadd.f32 %v1753_v53, %v1650_v8 }
 0x1fd   : > { %v1804_v0 = vadd.f32 %v3274_v40, %v1784_v61 }
 0x1ff   : > { %1821 = vst.msk [vmem:[%s2322_s21 + $0x30] sm:$0xff] %vm1814_vm9, %v1804_v0 }
 0x200   : > { %v1651_v1 = vpop.f32.mrf.mxu0 }
 0x201   : > { %v1652_v3 = vadd.f32 %v3264_v10, %v1651_v1 }
 0x203   : > { %v1785_v12 = vadd.f32 %v1755_v23, %v1652_v3 }
 0x205   : > { %v1805_v6 = vadd.f32 %v3274_v40, %v1785_v12 }
 0x207   : > { %1822 = vst.msk [vmem:[%s2322_s21 + $0x38] sm:$0xff] %vm1814_vm9, %v1805_v6 }
 0x211   : > { %v1669_v9 = vpop.f32.mrf.mxu2 }
 0x212   : > { %v1670_v17 = vadd.f32 %v3264_v10, %v1669_v9 }
 0x214   : > { %v1792_v62 = vadd.f32 %v1773_v7, %v1670_v17 }
 0x216   : > { %v1812_v18 = vadd.f32 %v3274_v40, %v1792_v62 }
 0x218   : > { %1829 = vst.msk [vmem:[%s2322_s21 + $0x70] sm:$0xff] %vm1814_vm9, %v1812_v18 }
 0x219   : > { %v1671_v22 = vpop.f32.mrf.mxu2 }
 0x21a   : > { %v1672_v19 = vadd.f32 %v3264_v10, %v1671_v22 }
 0x21c   : > { %v1793_v51 = vadd.f32 %v1775_v20, %v1672_v19 }
 0x21e   : > { %v1813_v24 = vadd.f32 %v3274_v40, %v1793_v51 }
 0x220   : > { %1830 = vst.msk [vmem:[%s2322_s21 + $0x78] sm:$0xff] %vm1814_vm9, %v1813_v24 }
 0x221   : > { %2119 = shalt.err (!%p2116_p7)
}
 0x222   : > { %s2189_s28 = smov 128   ;;  %s2190_s21 = smov 8  }
 0x223   : > { %1995 = dma.vmem_to_hbm [thread:$0]  (%p2292_p3), %s1848_s12, 2048, %s1850_s13, %s1832_s25, %s2189_s28, %s2189_s28, %s2190_s21  }
 0x224 PF: > { %p2001_p9 = scmp.ge.s32.totalorder %s2186_s16, 2  ;;  %s1864_s24 = sand.u32 1, %s2158_s30  }
 0x225   : > { %s1865_s19 = scalar_lea.sflag [#allocation4], %s1864_s24 }
 0x226   : > { %p1998_p10 = pnand %p2001_p9, %p2301_p8 }
 0x228   : > { %p1999_p11 = pneg %p1998_p10 }
 0x22a   : > { %2153 = dma.done.wait (%p1999_p11), %s1865_s19, 2048  }
 0x22b   : > { %2155 = vsyncadd (%p1999_p11), %s1865_s19, 4294965248  ;;  %s22_s16 = sadd.s32 1, %s2186_s16   ;;  %s3404_s12 = sld [smem:[#allocation6_spill]] }
 0x22c   : > { %p19_p12 = scmp.ge.s32.totalorder %s22_s16, 6   ;;  %s3405_s14 = sld [smem:[#allocation7_spill]] }
 0x22d   : > { %s3406_s22 = sld [smem:[#allocation8_spill]]  ;;  %s3407_s30 = smov %s2162_s10 }
 0x22e   : > { %s3408_s10 = smov %s2166_s11  ;;  %s3409_s11 = smov %s2310_s27 }
 0x22f   : > { %s3410_s13 = smov %s2182_s15  ;;  %21 = sbr.rel (!%p19_p12) target bundleno = 5 (0x5), region = 98 }
 0x233   : > { %s3411_s15 = smov %s3406_s22 }
 0x234   :  { %1871 = vsyncpa [#allocation4], 1 }
 0x235   :  { %1873 = vsyncpa [#allocation4 + $0x1], 1 }

</bundles_post_ra>
